<compile_context>
chip_gen: v5e
topology: v5e:2x2
jax: 0.10.0
libtpu: 0.0.40
codegen_flags: <defaults>
</compile_context>

<pallas_src>
import numpy as np

import jax
import jax.numpy as jnp
from jax.experimental import pallas as pl
from jax.experimental.pallas import tpu as pltpu

EPS = 1e-5


def _silu(v):
    return v * jax.nn.sigmoid(v)


# ------------------------------ fused Residual kernel ------------------------------
def _residual_kernel(x_ref, e_ref,
                     chproj_ref, vmask_ref, bsel_ref,
                     g1_ref, be1_ref, band1_ref, cb1_ref,
                     g2_ref, be2_ref, band2_ref, cb2_ref,
                     aw1_ref, ab1_ref, aw2_ref, ab2_ref,
                     o_ref):
    f32, bf16 = jnp.float32, jnp.bfloat16
    x = x_ref[...]                                             # [BH, WC] f32
    nrows = x.shape[0]

    def batchnorm(h, gamma, beta):
        # Training-mode BatchNorm2d (biased var, eps=1e-5).  Channel c lives at lane
        # w*C + c; chproj[l, l'] = (l%C == l'%C)/W (bf16, entries exactly 0 or 1/16), so
        # one single-pass bf16 MXU matmul yields per-row per-channel means (already
        # broadcast back over w); a sublane reduce finishes the batch average.
        cm = jnp.dot(h.astype(bf16), chproj_ref[...], preferred_element_type=f32)
        mean = jnp.mean(cm, axis=0, keepdims=True)             # [1, WC]
        d = h - mean
        cv = jnp.dot((d * d).astype(bf16), chproj_ref[...], preferred_element_type=f32)
        var = jnp.mean(cv, axis=0, keepdims=True)              # [1, WC]  (biased)
        return d * jax.lax.rsqrt(var + EPS) * gamma + beta

    def conv3x3(h, band_ref, bias):
        # 3x3 "same" conv as ONE K=384 MXU matmul on the lane-dense slab:
        #   * vertical taps / zero rows / batch separation -> XLU sublane roll + 0/1
        #     edge mask on the VPU (no MXU shift matmuls)
        #   * horizontal taps + horizontal zero padding    -> banded [3*WC, WC] bf16
        #     weights, LHS = [up | center | dn] lane-concat ([BH, 3*WC] bf16)
        # f32 accumulation.
        hb = h.astype(bf16)
        up = (pltpu.roll(h, 1, axis=0) * vmask_ref[0]).astype(bf16)          # row h-1
        dn = (pltpu.roll(h, nrows - 1, axis=0) * vmask_ref[1]).astype(bf16)  # row h+1
        lhs = jnp.concatenate([up, hb, dn], axis=1)            # [BH, 3*WC] bf16
        return jnp.dot(lhs, band_ref[...], preferred_element_type=f32) + bias

    # block1: SiLU -> BatchNorm2d -> Conv2d(3x3, pad=1)
    h = conv3x3(batchnorm(_silu(x), g1_ref[...], be1_ref[...]), band1_ref, cb1_ref[...])

    # + time_adaptor(t_emb) + time_adaptor(y_emb): the adaptor MLP runs ONCE on the
    # stacked [t; y] ([2B, D]) matrix; its second linear is pre-tiled to [D, WC] so the
    # output is already lane-dense.  The [B, WC] -> [BH, WC] row broadcast is pure VPU
    # work against a precomputed per-batch 0/1 row-select mask (no K=2 MXU matmul).
    e = e_ref[...]                                                            # [2B, D]
    h1 = _silu(jnp.dot(e.astype(bf16), aw1_ref[...], preferred_element_type=f32)
               + ab1_ref[...])
    ad = (jnp.dot(h1.astype(bf16), aw2_ref[...], preferred_element_type=f32)
          + ab2_ref[...])                                                     # [2B, WC]
    nb = ad.shape[0] // 2
    add_wc = ad[:nb, :] + ad[nb:, :]                                          # [B, WC]
    bcast = bsel_ref[0] * add_wc[0:1, :]
    for b in range(1, nb):
        bcast = bcast + bsel_ref[b] * add_wc[b:b + 1, :]                      # [BH, WC]
    h = h + bcast

    # block2 + residual connection
    h = conv3x3(batchnorm(_silu(h), g2_ref[...], be2_ref[...]), band2_ref, cb2_ref[...])
    o_ref[...] = x + h


# ------------------------------ host-side packing helpers ------------------------------
def _band_weights_packed(conv_w, W):
    # conv_w: [Cout, Cin, 3, 3] (OIHW).  Packed banded weights [3*W*C, W*C]:
    # row block ky, entry [wi*C+ci, w*C+co] = K[co, ci, ky, kx] with wi = w + kx - 1
    # (out-of-range wi simply absent => horizontal zero padding).
    k = np.asarray(conv_w)
    C = k.shape[0]
    wb = np.zeros((3, W * C, W * C), np.float32)
    for ky in range(3):
        for kx in range(3):
            tap = k[:, :, ky, kx].T                     # [ci, co]
            for w in range(W):
                wi = w + kx - 1
                if 0 <= wi < W:
                    wb[ky, wi * C:(wi + 1) * C, w * C:(w + 1) * C] = tap
    return jnp.asarray(wb.reshape(3 * W * C, W * C), jnp.bfloat16)


def _edge_masks(B, H):
    # vmask[0][i]=0 where row i is the top row of its image (up-tap padding / batch
    # separation / global roll wrap); vmask[1] likewise for the bottom row.
    m = np.ones((2, B * H, 1), np.float32)
    for b in range(B):
        m[0, b * H, 0] = 0.0
        m[1, b * H + H - 1, 0] = 0.0
    return jnp.asarray(m)


def _batch_select(B, H):
    # bsel[b][i] = 1.0 iff slab row i belongs to image b.
    s = np.zeros((B, B * H, 1), np.float32)
    for b in range(B):
        s[b, b * H:(b + 1) * H, 0] = 1.0
    return jnp.asarray(s)


def init_params(key, B, C, H, W, D):
    # Lane-dense packing hard-codes a full 128-lane slab; other shapes would silently
    # reintroduce masked/partial lanes (big perf cliff), so assert.
    assert W * C == 128, "lane-dense packing assumes W * C == 128"

    ks = jax.random.split(key, 12)
    conv1_w = 0.1 * jax.random.normal(ks[0], (C, C, 3, 3), jnp.float32)   # OIHW
    conv1_b = 0.1 * jax.random.normal(ks[1], (C,), jnp.float32)
    conv2_w = 0.1 * jax.random.normal(ks[2], (C, C, 3, 3), jnp.float32)
    conv2_b = 0.1 * jax.random.normal(ks[3], (C,), jnp.float32)
    bn1_g = 1.0 + 0.1 * jax.random.normal(ks[4], (C,), jnp.float32)
    bn1_b = 0.1 * jax.random.normal(ks[5], (C,), jnp.float32)
    bn2_g = 1.0 + 0.1 * jax.random.normal(ks[6], (C,), jnp.float32)
    bn2_b = 0.1 * jax.random.normal(ks[7], (C,), jnp.float32)
    ta_w1 = 0.2 * jax.random.normal(ks[8], (D, D), jnp.float32)           # [in, out]
    ta_b1 = 0.1 * jax.random.normal(ks[9], (D,), jnp.float32)
    ta_w2 = 0.2 * jax.random.normal(ks[10], (D, C), jnp.float32)
    ta_b2 = 0.1 * jax.random.normal(ks[11], (C,), jnp.float32)
    # (the PyTorch module also owns a `y_adaptor`; its forward never uses it.)

    p = dict(conv1_w=conv1_w, conv1_b=conv1_b, conv2_w=conv2_w, conv2_b=conv2_b,
             bn1_g=bn1_g, bn1_b=bn1_b, bn2_g=bn2_g, bn2_b=bn2_b,
             ta_w1=ta_w1, ta_b1=ta_b1, ta_w2=ta_w2, ta_b2=ta_b2)

    # kernel-friendly, one-time host-side packing
    p["conv1_band"] = _band_weights_packed(conv1_w, W)          # [3*WC, WC] bf16
    p["conv2_band"] = _band_weights_packed(conv2_w, W)
    p["conv1_bias_wc"] = jnp.tile(conv1_b, W)[None, :]          # [1, WC] f32
    p["conv2_bias_wc"] = jnp.tile(conv2_b, W)[None, :]
    p["bn1_g_wc"] = jnp.tile(bn1_g, W)[None, :]
    p["bn1_b_wc"] = jnp.tile(bn1_b, W)[None, :]
    p["bn2_g_wc"] = jnp.tile(bn2_g, W)[None, :]
    p["bn2_b_wc"] = jnp.tile(bn2_b, W)[None, :]
    # channel-averaging projector (entries exactly 0 or 1/W=2^-4 -> exact in bf16)
    p["chproj"] = jnp.asarray(
        np.kron(np.ones((W, W), np.float32), np.eye(C, dtype=np.float32)) / W,
        jnp.bfloat16)                                           # [WC, WC] bf16
    p["vmask"] = _edge_masks(B, H)                              # [2, BH, 1] f32
    p["bsel"] = _batch_select(B, H)                             # [B, BH, 1] f32
    # adaptor: bf16 weights (single-pass MXU); second linear pre-tiled to lane-dense WC
    p["ta_w1_bf"] = ta_w1.astype(jnp.bfloat16)                  # [D, D] bf16
    p["ta_b1_2"] = ta_b1[None, :]                               # [1, D] f32
    p["ta_w2_wc"] = jnp.tile(ta_w2, (1, W)).astype(jnp.bfloat16)  # [D, WC] bf16
    p["ta_b2_wc"] = jnp.tile(ta_b2, W)[None, :]                 # [1, WC] f32
    return p


# ------------------------------ slab-level entry (chainable) ------------------------------
def _residual_slab(x2d, emb, p):
    # x2d: [B*H, W*C] f32 lane-dense slab; emb: [2B, D] f32 stacked [t_emb; y_emb].
    # Adjacent UNet layers should call this slab->slab (inside one jit) so the
    # NCHW<->slab relayout happens only once at network entry/exit.
    BH, WC = x2d.shape
    twoB, D = emb.shape
    flops = int(2 * BH * (3 * WC) * WC * 2          # two merged conv matmuls (K=384)
                + 4 * BH * WC * WC * 2              # four BN stat matmuls
                + twoB * D * D * 2 + twoB * D * WC * 2   # adaptor MLP
                + 40 * BH * WC)                     # elementwise
    cost = pl.CostEstimate(
        flops=flops,
        transcendentals=int(2 * BH * WC + twoB * D + 4 * WC),
        bytes_accessed=int(4 * (2 * BH * WC + twoB * D)
                           + 2 * (WC * WC + 2 * 3 * WC * WC + D * WC + D * D)
                           + 4 * 12 * WC))
    return pl.pallas_call(
        _residual_kernel,
        out_shape=jax.ShapeDtypeStruct((BH, WC), jnp.float32),
        input_output_aliases={0: 0},      # x slab aliased to the output buffer
        cost_estimate=cost,
    )(x2d, emb,
      p["chproj"], p["vmask"], p["bsel"],
      p["bn1_g_wc"], p["bn1_b_wc"], p["conv1_band"], p["conv1_bias_wc"],
      p["bn2_g_wc"], p["bn2_b_wc"], p["conv2_band"], p["conv2_bias_wc"],
      p["ta_w1_bf"], p["ta_b1_2"], p["ta_w2_wc"], p["ta_b2_wc"])


# ------------------------------ NCHW forward wrapper ------------------------------
@jax.jit
def residual_forward(x_nchw, t_emb, y_emb, p):
    B, C, H, W = x_nchw.shape
    # one-time relayout to the lane-dense slab: rows = (b, h), lanes = (w, c), W*C = 128
    x2d = jnp.transpose(x_nchw, (0, 2, 3, 1)).reshape(B * H, W * C)
    emb = jnp.concatenate([t_emb, y_emb], axis=0)                   # [2B, D]
    out2d = _residual_slab(x2d, emb, p)
    return out2d.reshape(B, H, W, C).transpose(0, 3, 1, 2)


# ------------------------------ pure-JAX reference ------------------------------
def ref_forward(x, t_emb, y_emb, p):
    hp = jax.lax.Precision.HIGHEST

    def bn(v, g, b):
        m = jnp.mean(v, axis=(0, 2, 3), keepdims=True)
        var = jnp.mean((v - m) ** 2, axis=(0, 2, 3), keepdims=True)
        return (v - m) * jax.lax.rsqrt(var + EPS) * g[None, :, None, None] + b[None, :, None, None]

    def conv(v, w, b):
        o = jax.lax.conv_general_dilated(
            v, w, window_strides=(1, 1), padding=((1, 1), (1, 1)),
            dimension_numbers=("NCHW", "OIHW", "NCHW"), precision=hp)
        return o + b[None, :, None, None]

    def adaptor(e):
        h1 = _silu(jnp.dot(e, p["ta_w1"], precision=hp) + p["ta_b1"])
        return jnp.dot(h1, p["ta_w2"], precision=hp) + p["ta_b2"]

    h = conv(bn(_silu(x), p["bn1_g"], p["bn1_b"]), p["conv1_w"], p["conv1_b"])
    h = h + adaptor(t_emb)[:, :, None, None] + adaptor(y_emb)[:, :, None, None]
    h = conv(bn(_silu(h), p["bn2_g"], p["bn2_b"]), p["conv2_w"], p["conv2_b"])
    return x + h


# ------------------------------ main ------------------------------
if __name__ == "__main__":
    B, C, H, W = 2, 8, 16, 16
    T_DIM = 32  # t_emb_dim == y_emb_dim (reference forward applies time_adaptor to both)

    key = jax.random.PRNGKey(0)
    kx, kt, kyy, kp = jax.random.split(key, 4)
    x = jax.random.normal(kx, (B, C, H, W), jnp.float32)
    t_emb = jax.random.normal(kt, (B, T_DIM), jnp.float32)
    y_emb = jax.random.normal(kyy, (B, T_DIM), jnp.float32)
    params = init_params(kp, B, C, H, W, T_DIM)

    out = jax.block_until_ready(residual_forward(x, t_emb, y_emb, params))
    ref = jax.block_until_ready(ref_forward(x, t_emb, y_emb, params))

    assert out.shape == x.shape and out.dtype == x.dtype
    max_err = float(jnp.max(jnp.abs(out - ref)))
    # Error budget vs the f32 HIGHEST reference: bf16 conv weights (~2^-8 rel) through
    # two 3x3 convs (~1.5e-2) + bf16 BN-stat / adaptor matmul operands (~2^-9 rel on
    # mean/var and adaptor outputs, <1e-2 after conv amplification).  5e-2 keeps margin
    # while still catching any layout / tap / roll-direction / BN-stat bug (those
    # produce O(1) errors).
    assert max_err < 5e-2, f"mismatch vs reference: max abs err = {max_err}"
    print("KERNEL_OK")
</pallas_src>

<mosaic_0001>
module attributes {stable_mosaic.version = 11 : i64} {
  func.func @_residual_kernel(%arg0: memref<32x128xf32, #tpu.memory_space<vmem>>, %arg1: memref<4x32xf32, #tpu.memory_space<vmem>>, %arg2: memref<128x128xbf16, #tpu.memory_space<vmem>>, %arg3: memref<2x32x1xf32, #tpu.memory_space<vmem>>, %arg4: memref<2x32x1xf32, #tpu.memory_space<vmem>>, %arg5: memref<1x128xf32, #tpu.memory_space<vmem>>, %arg6: memref<1x128xf32, #tpu.memory_space<vmem>>, %arg7: memref<384x128xbf16, #tpu.memory_space<vmem>>, %arg8: memref<1x128xf32, #tpu.memory_space<vmem>>, %arg9: memref<1x128xf32, #tpu.memory_space<vmem>>, %arg10: memref<1x128xf32, #tpu.memory_space<vmem>>, %arg11: memref<384x128xbf16, #tpu.memory_space<vmem>>, %arg12: memref<1x128xf32, #tpu.memory_space<vmem>>, %arg13: memref<32x32xbf16, #tpu.memory_space<vmem>>, %arg14: memref<1x32xf32, #tpu.memory_space<vmem>>, %arg15: memref<32x128xbf16, #tpu.memory_space<vmem>>, %arg16: memref<1x128xf32, #tpu.memory_space<vmem>>, %arg17: memref<32x128xf32, #tpu.memory_space<vmem>>) attributes {dimension_semantics = [], scalar_prefetch = 0 : i64, scratch_operands = 0 : i64, tpu.core_type = #tpu.core_type<tc>} {
    %c0 = arith.constant 0 : index
    %c0_0 = arith.constant 0 : index
    %0 = vector.load %arg0[%c0, %c0_0] : memref<32x128xf32, #tpu.memory_space<vmem>>, vector<32x128xf32>
    %1 = arith.negf %0 : vector<32x128xf32>
    %2 = math.exp %1 : vector<32x128xf32>
    %cst = arith.constant 1.000000e+00 : f32
    %3 = vector.broadcast %cst : f32 to vector<32x128xf32>
    %4 = arith.addf %3, %2 : vector<32x128xf32>
    %5 = arith.divf %3, %4 : vector<32x128xf32>
    %6 = arith.mulf %0, %5 : vector<32x128xf32>
    %c0_1 = arith.constant 0 : index
    %c0_2 = arith.constant 0 : index
    %7 = vector.load %arg5[%c0_1, %c0_2] : memref<1x128xf32, #tpu.memory_space<vmem>>, vector<1x128xf32>
    %c0_3 = arith.constant 0 : index
    %c0_4 = arith.constant 0 : index
    %8 = vector.load %arg6[%c0_3, %c0_4] : memref<1x128xf32, #tpu.memory_space<vmem>>, vector<1x128xf32>
    %9 = arith.truncf %6 : vector<32x128xf32> to vector<32x128xbf16>
    %c0_5 = arith.constant 0 : index
    %c0_6 = arith.constant 0 : index
    %10 = vector.load %arg2[%c0_5, %c0_6] : memref<128x128xbf16, #tpu.memory_space<vmem>>, vector<128x128xbf16>
    %cst_7 = arith.constant dense<0.000000e+00> : vector<32x128xf32>
    %11 = tpu.matmul %9, %10, %cst_7 {dimension_numbers = #tpu.dot_dimension_numbers<[1], [0], [0], [1], [0, 0, 1, 1], [], []>} : vector<32x128xbf16>, vector<128x128xbf16>, vector<32x128xf32> -> vector<32x128xf32>
    %cst_8 = arith.constant dense<0.000000e+00> : vector<128xf32>
    %12 = vector.multi_reduction <add>, %11, %cst_8 [0] : vector<32x128xf32> to vector<128xf32>
    %13 = vector.shape_cast %12 : vector<128xf32> to vector<1x128xf32>
    %cst_9 = arith.constant 3.200000e+01 : f32
    %14 = vector.broadcast %cst_9 : f32 to vector<1x128xf32>
    %15 = arith.divf %13, %14 : vector<1x128xf32>
    %16 = vector.broadcast %15 : vector<1x128xf32> to vector<32x128xf32>
    %17 = arith.subf %6, %16 : vector<32x128xf32>
    %18 = arith.mulf %17, %17 : vector<32x128xf32>
    %19 = arith.truncf %18 : vector<32x128xf32> to vector<32x128xbf16>
    %c0_10 = arith.constant 0 : index
    %c0_11 = arith.constant 0 : index
    %20 = vector.load %arg2[%c0_10, %c0_11] : memref<128x128xbf16, #tpu.memory_space<vmem>>, vector<128x128xbf16>
    %cst_12 = arith.constant dense<0.000000e+00> : vector<32x128xf32>
    %21 = tpu.matmul %19, %20, %cst_12 {dimension_numbers = #tpu.dot_dimension_numbers<[1], [0], [0], [1], [0, 0, 1, 1], [], []>} : vector<32x128xbf16>, vector<128x128xbf16>, vector<32x128xf32> -> vector<32x128xf32>
    %cst_13 = arith.constant dense<0.000000e+00> : vector<128xf32>
    %22 = vector.multi_reduction <add>, %21, %cst_13 [0] : vector<32x128xf32> to vector<128xf32>
    %23 = vector.shape_cast %22 : vector<128xf32> to vector<1x128xf32>
    %cst_14 = arith.constant 3.200000e+01 : f32
    %24 = vector.broadcast %cst_14 : f32 to vector<1x128xf32>
    %25 = arith.divf %23, %24 : vector<1x128xf32>
    %cst_15 = arith.constant 9.99999974E-6 : f32
    %26 = vector.broadcast %cst_15 : f32 to vector<1x128xf32>
    %27 = arith.addf %25, %26 : vector<1x128xf32>
    %28 = math.rsqrt %27 : vector<1x128xf32>
    %29 = vector.broadcast %28 : vector<1x128xf32> to vector<32x128xf32>
    %30 = arith.mulf %17, %29 : vector<32x128xf32>
    %31 = vector.broadcast %7 : vector<1x128xf32> to vector<32x128xf32>
    %32 = arith.mulf %30, %31 : vector<32x128xf32>
    %33 = vector.broadcast %8 : vector<1x128xf32> to vector<32x128xf32>
    %34 = arith.addf %32, %33 : vector<32x128xf32>
    %c0_16 = arith.constant 0 : index
    %c0_17 = arith.constant 0 : index
    %35 = vector.load %arg8[%c0_16, %c0_17] : memref<1x128xf32, #tpu.memory_space<vmem>>, vector<1x128xf32>
    %36 = arith.truncf %34 : vector<32x128xf32> to vector<32x128xbf16>
    %c1_i32 = arith.constant 1 : i32
    %37 = tpu.dynamic_rotate %34 by %c1_i32 dim 0 : vector<32x128xf32>, i32 -> vector<32x128xf32>
    %c0_18 = arith.constant 0 : index
    %c0_19 = arith.constant 0 : index
    %c0_20 = arith.constant 0 : index
    %38 = vector.load %arg3[%c0_18, %c0_19, %c0_20] : memref<2x32x1xf32, #tpu.memory_space<vmem>>, vector<1x32x1xf32>
    %39 = vector.shape_cast %38 : vector<1x32x1xf32> to vector<32x1xf32>
    %40 = vector.broadcast %39 : vector<32x1xf32> to vector<32x128xf32>
    %41 = arith.mulf %37, %40 : vector<32x128xf32>
    %42 = arith.truncf %41 : vector<32x128xf32> to vector<32x128xbf16>
    %c31_i32 = arith.constant 31 : i32
    %43 = tpu.dynamic_rotate %34 by %c31_i32 dim 0 : vector<32x128xf32>, i32 -> vector<32x128xf32>
    %c1 = arith.constant 1 : index
    %c0_21 = arith.constant 0 : index
    %c0_22 = arith.constant 0 : index
    %44 = vector.load %arg3[%c1, %c0_21, %c0_22] : memref<2x32x1xf32, #tpu.memory_space<vmem>>, vector<1x32x1xf32>
    %45 = vector.shape_cast %44 : vector<1x32x1xf32> to vector<32x1xf32>
    %46 = vector.broadcast %45 : vector<32x1xf32> to vector<32x128xf32>
    %47 = arith.mulf %43, %46 : vector<32x128xf32>
    %48 = arith.truncf %47 : vector<32x128xf32> to vector<32x128xbf16>
    %49 = tpu.concatenate %42, %36, %48 in 1 : vector<32x128xbf16>, vector<32x128xbf16>, vector<32x128xbf16> -> vector<32x384xbf16>
    %c0_23 = arith.constant 0 : index
    %c0_24 = arith.constant 0 : index
    %50 = vector.load %arg7[%c0_23, %c0_24] : memref<384x128xbf16, #tpu.memory_space<vmem>>, vector<384x128xbf16>
    %cst_25 = arith.constant dense<0.000000e+00> : vector<32x128xf32>
    %51 = tpu.matmul %49, %50, %cst_25 {dimension_numbers = #tpu.dot_dimension_numbers<[1], [0], [0], [1], [0, 0, 1, 1], [], []>} : vector<32x384xbf16>, vector<384x128xbf16>, vector<32x128xf32> -> vector<32x128xf32>
    %52 = vector.broadcast %35 : vector<1x128xf32> to vector<32x128xf32>
    %53 = arith.addf %51, %52 : vector<32x128xf32>
    %c0_26 = arith.constant 0 : index
    %c0_27 = arith.constant 0 : index
    %54 = vector.load %arg1[%c0_26, %c0_27] : memref<4x32xf32, #tpu.memory_space<vmem>>, vector<4x32xf32>
    %55 = arith.truncf %54 : vector<4x32xf32> to vector<4x32xbf16>
    %c0_28 = arith.constant 0 : index
    %c0_29 = arith.constant 0 : index
    %56 = vector.load %arg13[%c0_28, %c0_29] : memref<32x32xbf16, #tpu.memory_space<vmem>>, vector<32x32xbf16>
    %cst_30 = arith.constant dense<0.000000e+00> : vector<4x32xf32>
    %57 = tpu.matmul %55, %56, %cst_30 {dimension_numbers = #tpu.dot_dimension_numbers<[1], [0], [0], [1], [0, 0, 1, 1], [], []>} : vector<4x32xbf16>, vector<32x32xbf16>, vector<4x32xf32> -> vector<4x32xf32>
    %c0_31 = arith.constant 0 : index
    %c0_32 = arith.constant 0 : index
    %58 = vector.load %arg14[%c0_31, %c0_32] : memref<1x32xf32, #tpu.memory_space<vmem>>, vector<1x32xf32>
    %59 = vector.broadcast %58 : vector<1x32xf32> to vector<4x32xf32>
    %60 = arith.addf %57, %59 : vector<4x32xf32>
    %61 = arith.negf %60 : vector<4x32xf32>
    %62 = math.exp %61 : vector<4x32xf32>
    %cst_33 = arith.constant 1.000000e+00 : f32
    %63 = vector.broadcast %cst_33 : f32 to vector<4x32xf32>
    %64 = arith.addf %63, %62 : vector<4x32xf32>
    %65 = arith.divf %63, %64 : vector<4x32xf32>
    %66 = arith.mulf %60, %65 : vector<4x32xf32>
    %67 = arith.truncf %66 : vector<4x32xf32> to vector<4x32xbf16>
    %c0_34 = arith.constant 0 : index
    %c0_35 = arith.constant 0 : index
    %68 = vector.load %arg15[%c0_34, %c0_35] : memref<32x128xbf16, #tpu.memory_space<vmem>>, vector<32x128xbf16>
    %cst_36 = arith.constant dense<0.000000e+00> : vector<4x128xf32>
    %69 = tpu.matmul %67, %68, %cst_36 {dimension_numbers = #tpu.dot_dimension_numbers<[1], [0], [0], [1], [0, 0, 1, 1], [], []>} : vector<4x32xbf16>, vector<32x128xbf16>, vector<4x128xf32> -> vector<4x128xf32>
    %c0_37 = arith.constant 0 : index
    %c0_38 = arith.constant 0 : index
    %70 = vector.load %arg16[%c0_37, %c0_38] : memref<1x128xf32, #tpu.memory_space<vmem>>, vector<1x128xf32>
    %71 = vector.broadcast %70 : vector<1x128xf32> to vector<4x128xf32>
    %72 = arith.addf %69, %71 : vector<4x128xf32>
    %73 = vector.extract_strided_slice %72 {offsets = [0, 0], sizes = [2, 128], strides = [1, 1]} : vector<4x128xf32> to vector<2x128xf32>
    %74 = vector.extract_strided_slice %72 {offsets = [2, 0], sizes = [2, 128], strides = [1, 1]} : vector<4x128xf32> to vector<2x128xf32>
    %75 = arith.addf %73, %74 : vector<2x128xf32>
    %c0_39 = arith.constant 0 : index
    %c0_40 = arith.constant 0 : index
    %c0_41 = arith.constant 0 : index
    %76 = vector.load %arg4[%c0_39, %c0_40, %c0_41] : memref<2x32x1xf32, #tpu.memory_space<vmem>>, vector<1x32x1xf32>
    %77 = vector.shape_cast %76 : vector<1x32x1xf32> to vector<32x1xf32>
    %78 = vector.extract_strided_slice %75 {offsets = [0, 0], sizes = [1, 128], strides = [1, 1]} : vector<2x128xf32> to vector<1x128xf32>
    %79 = vector.broadcast %77 : vector<32x1xf32> to vector<32x128xf32>
    %80 = vector.broadcast %78 : vector<1x128xf32> to vector<32x128xf32>
    %81 = arith.mulf %79, %80 : vector<32x128xf32>
    %c1_42 = arith.constant 1 : index
    %c0_43 = arith.constant 0 : index
    %c0_44 = arith.constant 0 : index
    %82 = vector.load %arg4[%c1_42, %c0_43, %c0_44] : memref<2x32x1xf32, #tpu.memory_space<vmem>>, vector<1x32x1xf32>
    %83 = vector.shape_cast %82 : vector<1x32x1xf32> to vector<32x1xf32>
    %84 = vector.extract_strided_slice %75 {offsets = [1, 0], sizes = [1, 128], strides = [1, 1]} : vector<2x128xf32> to vector<1x128xf32>
    %85 = vector.broadcast %83 : vector<32x1xf32> to vector<32x128xf32>
    %86 = vector.broadcast %84 : vector<1x128xf32> to vector<32x128xf32>
    %87 = arith.mulf %85, %86 : vector<32x128xf32>
    %88 = arith.addf %81, %87 : vector<32x128xf32>
    %89 = arith.addf %53, %88 : vector<32x128xf32>
    %90 = arith.negf %89 : vector<32x128xf32>
    %91 = math.exp %90 : vector<32x128xf32>
    %cst_45 = arith.constant 1.000000e+00 : f32
    %92 = vector.broadcast %cst_45 : f32 to vector<32x128xf32>
    %93 = arith.addf %92, %91 : vector<32x128xf32>
    %94 = arith.divf %92, %93 : vector<32x128xf32>
    %95 = arith.mulf %89, %94 : vector<32x128xf32>
    %c0_46 = arith.constant 0 : index
    %c0_47 = arith.constant 0 : index
    %96 = vector.load %arg9[%c0_46, %c0_47] : memref<1x128xf32, #tpu.memory_space<vmem>>, vector<1x128xf32>
    %c0_48 = arith.constant 0 : index
    %c0_49 = arith.constant 0 : index
    %97 = vector.load %arg10[%c0_48, %c0_49] : memref<1x128xf32, #tpu.memory_space<vmem>>, vector<1x128xf32>
    %98 = arith.truncf %95 : vector<32x128xf32> to vector<32x128xbf16>
    %c0_50 = arith.constant 0 : index
    %c0_51 = arith.constant 0 : index
    %99 = vector.load %arg2[%c0_50, %c0_51] : memref<128x128xbf16, #tpu.memory_space<vmem>>, vector<128x128xbf16>
    %cst_52 = arith.constant dense<0.000000e+00> : vector<32x128xf32>
    %100 = tpu.matmul %98, %99, %cst_52 {dimension_numbers = #tpu.dot_dimension_numbers<[1], [0], [0], [1], [0, 0, 1, 1], [], []>} : vector<32x128xbf16>, vector<128x128xbf16>, vector<32x128xf32> -> vector<32x128xf32>
    %cst_53 = arith.constant dense<0.000000e+00> : vector<128xf32>
    %101 = vector.multi_reduction <add>, %100, %cst_53 [0] : vector<32x128xf32> to vector<128xf32>
    %102 = vector.shape_cast %101 : vector<128xf32> to vector<1x128xf32>
    %cst_54 = arith.constant 3.200000e+01 : f32
    %103 = vector.broadcast %cst_54 : f32 to vector<1x128xf32>
    %104 = arith.divf %102, %103 : vector<1x128xf32>
    %105 = vector.broadcast %104 : vector<1x128xf32> to vector<32x128xf32>
    %106 = arith.subf %95, %105 : vector<32x128xf32>
    %107 = arith.mulf %106, %106 : vector<32x128xf32>
    %108 = arith.truncf %107 : vector<32x128xf32> to vector<32x128xbf16>
    %c0_55 = arith.constant 0 : index
    %c0_56 = arith.constant 0 : index
    %109 = vector.load %arg2[%c0_55, %c0_56] : memref<128x128xbf16, #tpu.memory_space<vmem>>, vector<128x128xbf16>
    %cst_57 = arith.constant dense<0.000000e+00> : vector<32x128xf32>
    %110 = tpu.matmul %108, %109, %cst_57 {dimension_numbers = #tpu.dot_dimension_numbers<[1], [0], [0], [1], [0, 0, 1, 1], [], []>} : vector<32x128xbf16>, vector<128x128xbf16>, vector<32x128xf32> -> vector<32x128xf32>
    %cst_58 = arith.constant dense<0.000000e+00> : vector<128xf32>
    %111 = vector.multi_reduction <add>, %110, %cst_58 [0] : vector<32x128xf32> to vector<128xf32>
    %112 = vector.shape_cast %111 : vector<128xf32> to vector<1x128xf32>
    %cst_59 = arith.constant 3.200000e+01 : f32
    %113 = vector.broadcast %cst_59 : f32 to vector<1x128xf32>
    %114 = arith.divf %112, %113 : vector<1x128xf32>
    %cst_60 = arith.constant 9.99999974E-6 : f32
    %115 = vector.broadcast %cst_60 : f32 to vector<1x128xf32>
    %116 = arith.addf %114, %115 : vector<1x128xf32>
    %117 = math.rsqrt %116 : vector<1x128xf32>
    %118 = vector.broadcast %117 : vector<1x128xf32> to vector<32x128xf32>
    %119 = arith.mulf %106, %118 : vector<32x128xf32>
    %120 = vector.broadcast %96 : vector<1x128xf32> to vector<32x128xf32>
    %121 = arith.mulf %119, %120 : vector<32x128xf32>
    %122 = vector.broadcast %97 : vector<1x128xf32> to vector<32x128xf32>
    %123 = arith.addf %121, %122 : vector<32x128xf32>
    %c0_61 = arith.constant 0 : index
    %c0_62 = arith.constant 0 : index
    %124 = vector.load %arg12[%c0_61, %c0_62] : memref<1x128xf32, #tpu.memory_space<vmem>>, vector<1x128xf32>
    %125 = arith.truncf %123 : vector<32x128xf32> to vector<32x128xbf16>
    %c1_i32_63 = arith.constant 1 : i32
    %126 = tpu.dynamic_rotate %123 by %c1_i32_63 dim 0 : vector<32x128xf32>, i32 -> vector<32x128xf32>
    %c0_64 = arith.constant 0 : index
    %c0_65 = arith.constant 0 : index
    %c0_66 = arith.constant 0 : index
    %127 = vector.load %arg3[%c0_64, %c0_65, %c0_66] : memref<2x32x1xf32, #tpu.memory_space<vmem>>, vector<1x32x1xf32>
    %128 = vector.shape_cast %127 : vector<1x32x1xf32> to vector<32x1xf32>
    %129 = vector.broadcast %128 : vector<32x1xf32> to vector<32x128xf32>
    %130 = arith.mulf %126, %129 : vector<32x128xf32>
    %131 = arith.truncf %130 : vector<32x128xf32> to vector<32x128xbf16>
    %c31_i32_67 = arith.constant 31 : i32
    %132 = tpu.dynamic_rotate %123 by %c31_i32_67 dim 0 : vector<32x128xf32>, i32 -> vector<32x128xf32>
    %c1_68 = arith.constant 1 : index
    %c0_69 = arith.constant 0 : index
    %c0_70 = arith.constant 0 : index
    %133 = vector.load %arg3[%c1_68, %c0_69, %c0_70] : memref<2x32x1xf32, #tpu.memory_space<vmem>>, vector<1x32x1xf32>
    %134 = vector.shape_cast %133 : vector<1x32x1xf32> to vector<32x1xf32>
    %135 = vector.broadcast %134 : vector<32x1xf32> to vector<32x128xf32>
    %136 = arith.mulf %132, %135 : vector<32x128xf32>
    %137 = arith.truncf %136 : vector<32x128xf32> to vector<32x128xbf16>
    %138 = tpu.concatenate %131, %125, %137 in 1 : vector<32x128xbf16>, vector<32x128xbf16>, vector<32x128xbf16> -> vector<32x384xbf16>
    %c0_71 = arith.constant 0 : index
    %c0_72 = arith.constant 0 : index
    %139 = vector.load %arg11[%c0_71, %c0_72] : memref<384x128xbf16, #tpu.memory_space<vmem>>, vector<384x128xbf16>
    %cst_73 = arith.constant dense<0.000000e+00> : vector<32x128xf32>
    %140 = tpu.matmul %138, %139, %cst_73 {dimension_numbers = #tpu.dot_dimension_numbers<[1], [0], [0], [1], [0, 0, 1, 1], [], []>} : vector<32x384xbf16>, vector<384x128xbf16>, vector<32x128xf32> -> vector<32x128xf32>
    %141 = vector.broadcast %124 : vector<1x128xf32> to vector<32x128xf32>
    %142 = arith.addf %140, %141 : vector<32x128xf32>
    %143 = arith.addf %0, %142 : vector<32x128xf32>
    %c0_74 = arith.constant 0 : index
    %c0_75 = arith.constant 0 : index
    %144 = vector.load %arg17[%c0_74, %c0_75] : memref<32x128xf32, #tpu.memory_space<vmem>>, vector<32x128xf32>
    tpu.vector_store %arg17[%c0_74, %c0_75], %143 {strides = array<i32>} : memref<32x128xf32, #tpu.memory_space<vmem>>, vector<32x128xf32>,
    return
  }
}

</mosaic_0001>

<bundles_post_ra>
// kernel: residual_forward.1
= control target key start
LH: loop header
LB: loop body
LE: loop exit
PB: predicated region body
PF: predicated region fallthrough
CT: control target
= control target key end

     0   :  { %s2374_s2 = inlined_call_operand.vmem [shape: bf16[128,128], index: 2, kind: input, shape index: {}]   ;;  %s2375_s0 = inlined_call_operand.vmem [shape: f32[32,128], index: 0, kind: input, shape index: {}, may-alias: {0,17}]   ;;  %s2376_s3 = inlined_call_operand.vmem [shape: f32[2,32,1], index: 3, kind: input, shape index: {}]   ;;  %s2377_s13 = inlined_call_operand.vmem [shape: bf16[32,32], index: 13, kind: input, shape index: {}]   ;;  %s2378_s4 = inlined_call_operand.vmem [shape: f32[2,32,1], index: 4, kind: input, shape index: {}]   ;;  %s2379_s1 = inlined_call_operand.vmem [shape: f32[4,32], index: 1, kind: input, shape index: {}]   ;;  %s2380_s14 = inlined_call_operand.vmem [shape: f32[1,32], index: 14, kind: input, shape index: {}]   ;;  %s2381_s5 = inlined_call_operand.vmem [shape: f32[1,128], index: 5, kind: input, shape index: {}]   ;;  %s2382_s6 = inlined_call_operand.vmem [shape: f32[1,128], index: 6, kind: input, shape index: {}]   ;;  %s2383_s7 = inlined_call_operand.vmem [shape: bf16[384,128], index: 7, kind: input, shape index: {}]   ;;  %s2384_s15 = inlined_call_operand.vmem [shape: bf16[32,128], index: 15, kind: input, shape index: {}]   ;;  %s2385_s8 = inlined_call_operand.vmem [shape: f32[1,128], index: 8, kind: input, shape index: {}]   ;;  %s2386_s16 = inlined_call_operand.vmem [shape: f32[1,128], index: 16, kind: input, shape index: {}]   ;;  %s2387_s9 = inlined_call_operand.vmem [shape: f32[1,128], index: 9, kind: input, shape index: {}]   ;;  %s2388_s10 = inlined_call_operand.vmem [shape: f32[1,128], index: 10, kind: input, shape index: {}]   ;;  %s2389_s12 = inlined_call_operand.vmem [shape: f32[1,128], index: 12, kind: input, shape index: {}]   ;;  %s2390_s11 = inlined_call_operand.vmem [shape: bf16[384,128], index: 11, kind: input, shape index: {}]   ;;  %s2391_s17 = inlined_call_operand.vmem [shape: f32[32,128], index: 17, kind: output, shape index: {}, may-alias: {0,17}]  }
   0x1   :  { %2394 = sst [smem:[#allocation2_spill]] %s2374_s2 }
   0x2   :  { %2395 = sst [smem:[#allocation3_spill]] %s2375_s0 }
   0x3   :  { %s2396_s26 = sld [smem:[#allocation2_spill]] }
   0x4   :  { %s2397_s30 = sld [smem:[#allocation3_spill]] }
   0x9   :  { %v1849_v0 = vld [vmem:[%s2396_s26 + $0x38] sm:$0xff]  ;;  %v1855_v1 = vld [vmem:[%s2396_s26 + $0x30] sm:$0xff]  ;;  %v1886_v10 = vld [vmem:[%s2396_s26 + $0x28] sm:$0xff] }
   0xa   :  { %209 = vmatpush.bf16.msra.mxu0 %v1849_v0  ;;  %v1860_v2 = vld [vmem:[%s2397_s30] sm:$0xff]  ;;  %255 = vmatpush.bf16.msra.mxu1 %v1849_v0  ;;  %v1866_v3 = vld [vmem:[%s2397_s30 + $0x8] sm:$0xff]  ;;  %v1872_v5 = vld [vmem:[%s2397_s30 + $0x10] sm:$0xff] }
   0xb   :  { %v1376_v4 = vmul.f32 -1.442695, %v1860_v2  ;;  %v1877_v6 = vld [vmem:[%s2397_s30 + $0x18] sm:$0xff]  ;;  %v1377_v7 = vmul.f32 -1.442695, %v1866_v3  ;;  %v1893_v11 = vld [vmem:[%s2396_s26 + $0x20] sm:$0xff] }
   0xc   :  { %v1378_v8 = vmul.f32 -1.442695, %v1872_v5  ;;  %v1379_v9 = vmul.f32 -1.442695, %v1877_v6  ;;  %v1900_v18 = vld [vmem:[%s2396_s26 + $0x18] sm:$0xff]  ;;  %v1911_v21 = vld [vmem:[%s2396_s26 + $0x10] sm:$0xff] }
   0xd   :  { %1708 = vpow2.f32 %v1376_v4  ;;  %v1920_v25 = vld [vmem:[%s2396_s26 + $0x8] sm:$0xff]  ;;  %v1928_v37 = vld [vmem:[%s2396_s26] sm:$0xff] }
   0xe   :  { %210 = vmatpush.bf16.msra.mxu0 %v1855_v1  ;;  %1710 = vpow2.f32 %v1377_v7  ;;  %256 = vmatpush.bf16.msra.mxu1 %v1855_v1 }
   0xf   :  { %1712 = vpow2.f32 %v1378_v8 }
  0x10   :  { %1714 = vpow2.f32 %v1379_v9 }
  0x12   :  { %211 = vmatpush.bf16.msra.mxu0 %v1886_v10  ;;  %257 = vmatpush.bf16.msra.mxu1 %v1886_v10 }
  0x13   :  { %v1709_v12 = vpop.eup %1708 }
  0x14   :  { %v1711_v13 = vpop.eup %1710  ;;  %v73_v14 = vadd.f32 1.0, %v1709_v12 }
  0x15   :  { %v1713_v15 = vpop.eup %1712  ;;  %v74_v16 = vadd.f32 1.0, %v1711_v13 }
  0x16   :  { %v1715_v17 = vpop.eup %1714  ;;  %212 = vmatpush.bf16.msra.mxu0 %v1893_v11  ;;  %1716 = vrcp.f32 %v73_v14  ;;  %258 = vmatpush.bf16.msra.mxu1 %v1893_v11  ;;  %v1903_v19 = vadd.f32 1.0, %v1713_v15  ;;  %vm82_vm0 = vweird.f32 %v73_v14  ;;  %v88_v26 = vand.u32 2147483648, %v73_v14 }
  0x17   :  { %1718 = vrcp.f32 %v74_v16  ;;  %v1905_v20 = vadd.f32 1.0, %v1715_v17  ;;  %v86_v29 = vand.u32 2147483647, %v73_v14  ;;  %v103_v30 = vand.u32 2147483648, %v74_v16 }
  0x18   :  { %1720 = vrcp.f32 %v1903_v19  ;;  %vm97_vm2 = vweird.f32 %v74_v16  ;;  %v101_v33 = vand.u32 2147483647, %v74_v16  ;;  %v89_v39 = vor.u32 1.1754944e-38, %v88_v26 }
  0x19   :  { %1722 = vrcp.f32 %v1905_v20  ;;  %vm87_vm5 = vcmp.eq.f32.partialorder %v86_v29, 8.507059e+37  ;;  %v104_v43 = vor.u32 1.1754944e-38, %v103_v30  ;;  %vm112_vm8 = vweird.f32 %v1903_v19  ;;  %v1668_v30 = vld [vmem:[%s2377_s13 + $0x8] sm:$0xff] }
  0x1a   :  { %213 = vmatpush.bf16.msra.mxu0 %v1900_v18  ;;  %259 = vmatpush.bf16.msra.mxu1 %v1900_v18  ;;  %vm102_vm7 = vcmp.eq.f32.partialorder %v101_v33, 8.507059e+37  ;;  %vm127_vm10 = vweird.f32 %v1905_v20  ;;  %v116_v55 = vand.u32 2147483647, %v1903_v19  ;;  %v118_v56 = vand.u32 2147483648, %v1903_v19 }
  0x1b   :  { %v133_v57 = vand.u32 2147483648, %v1905_v20  ;;  %v131_v61 = vand.u32 2147483647, %v1905_v20  ;;  %v1754_v15 = vmov 32.0  }
  0x1c   :  { %v1717_v22 = vpop.eup %1716  ;;  %v119_v62 = vor.u32 1.1754944e-38, %v118_v56  ;;  %vm117_vm14 = vcmp.eq.f32.partialorder %v116_v55, 8.507059e+37  ;;  %1724 = vrcp.f32 %v1754_v15 }
  0x1d   :  { %v1719_v23 = vpop.eup %1718  ;;  %v78_v24 = vmul.f32 %v1717_v22, %v73_v14  ;;  %vm83_vm1 = vweird.f32 %v1717_v22  ;;  %v134_v63 = vor.u32 1.1754944e-38, %v133_v57  ;;  %vm132_vm15 = vcmp.eq.f32.partialorder %v131_v61, 8.507059e+37  ;;  %v1415_v57 = vld [vmem:[%s2376_s3 + $0x38] sm:$0xff] }
  0x1e   :  { %214 = vmatpush.bf16.msra.mxu0 %v1911_v21  ;;  %v93_v27 = vmul.f32 %v1719_v23, %v74_v16  ;;  %260 = vmatpush.bf16.msra.mxu1 %v1911_v21  ;;  %v1721_v31 = vpop.eup %1720  ;;  %vm98_vm3 = vweird.f32 %v1719_v23  ;;  %vm1931_vm4 = vmor %vm82_vm0, %vm83_vm1  ;;  %v1534_v61 = vld [vmem:[%s2378_s4 + $0x38] sm:$0xff]  ;;  %vm713_vm1 = vcmask 261120  }
  0x1f   :  { %v79_v28 = vsub.f32 1.0, %v78_v24  ;;  %v1723_v34 = vpop.eup %1722  ;;  %v108_v36 = vmul.f32 %v1721_v31, %v1903_v19  ;;  %vm99_vm6 = vmor %vm97_vm2, %vm98_vm3  ;;  %vm113_vm9 = vweird.f32 %v1721_v31 }
  0x20   :  { %v94_v32 = vsub.f32 1.0, %v93_v27  ;;  %v123_v41 = vmul.f32 %v1723_v34, %v1905_v20  ;;  %vm128_vm11 = vweird.f32 %v1723_v34  ;;  %vm114_vm12 = vmor %vm112_vm8, %vm113_vm9 }
  0x21   :  { %v80_v35 = vmul.f32 %v1717_v22, %v79_v28  ;;  %v109_v44 = vsub.f32 1.0, %v108_v36  ;;  %vm129_vm13 = vmor %vm127_vm10, %vm128_vm11 }
  0x22   :  { %215 = vmatpush.bf16.msra.mxu0 %v1920_v25  ;;  %v95_v40 = vmul.f32 %v1719_v23, %v94_v32  ;;  %261 = vmatpush.bf16.msra.mxu1 %v1920_v25  ;;  %v124_v46 = vsub.f32 1.0, %v123_v41  ;;  %v1725_v17 = vpop.eup %1724  ;;  %v1755_v32 = vmov 0  }
  0x23   :  { %v81_v42 = vadd.f32 %v1717_v22, %v80_v35  ;;  %v110_v48 = vmul.f32 %v1721_v31, %v109_v44  ;;  %v238_v19 = vmul.f32 32.0, %v1725_v17  ;;  %1697 = vset.pattern.permute.xlu0 %v1755_v32  ;;  %1698 = vset.pattern.permute.xlu1 %v1755_v32  ;;  %vm242_vm0 = vweird.f32 %v1725_v17 }
  0x24   :  { %v96_v45 = vadd.f32 %v1719_v23, %v95_v40  ;;  %v125_v51 = vmul.f32 %v1723_v34, %v124_v46  ;;  %1699 = vset.pattern.permute.xlu2 %v1755_v32  ;;  %v1414_v46 = vld [vmem:[%s2376_s3 + $0x30] sm:$0xff] }
  0x25   :  { %v85_v47 = vsel %vm1931_vm4, %v1717_v22, %v81_v42  ;;  %v111_v59 = vadd.f32 %v1721_v31, %v110_v48  ;;  %v239_v24 = vsub.f32 1.0, %v238_v19  ;;  %v1412_v48 = vld [vmem:[%s2376_s3 + $0x20] sm:$0xff]  ;;  %v1665_v19 = vld [vmem:[%s2383_s7 + $0xb0] sm:$0xff] }
  0x26   :  { %216 = vmatpush.bf16.msra.mxu0 %v1928_v37  ;;  %v90_v49 = vsel %vm87_vm5, %v89_v39, %v85_v47  ;;  %v100_v50 = vsel %vm99_vm6, %v1719_v23, %v96_v45  ;;  %262 = vmatpush.bf16.msra.mxu1 %v1928_v37  ;;  %v126_v60 = vadd.f32 %v1723_v34, %v125_v51  ;;  %v330_v39 = vld [vmem:[%s2376_s3 + $0x8] sm:$0xff]  ;;  %v331_v47 = vld [vmem:[%s2376_s3 + $0x10] sm:$0xff]  ;;  %v332_v51 = vld [vmem:[%s2376_s3 + $0x18] sm:$0xff] }
  0x27   :  { %v105_v52 = vsel %vm102_vm7, %v104_v43, %v100_v50  ;;  %v1943_v53 = vmul.f32 %v90_v49, %v1860_v2  ;;  %v115_v2 = vsel %vm114_vm12, %v1721_v31, %v111_v59  ;;  %v240_v28 = vmul.f32 %v1725_v17, %v239_v24  ;;  %345 = vperm.xlu1 %1698, %v331_v47   ;;  %v791_v59 = vld [vmem:[%s2378_s4] sm:$0xff]  ;;  %v1664_v24 = vld [vmem:[%s2383_s7 + $0xa8] sm:$0xff]  ;;  %v1653_v32 = vld [vmem:[%s2383_s7 + $0x50] sm:$0xff] }
  0x28   :  { %v138_v54 = vmul.f32 %v105_v52, %v1866_v3  ;;  %v130_v3 = vsel %vm129_vm13, %v1723_v34, %v126_v60  ;;  %v120_v4 = vsel %vm117_vm14, %v119_v62, %v115_v2  ;;  %v1667_v34 = vld [vmem:[%s2377_s13] sm:$0xff]  ;;  %377 = vperm.xlu2 %1699, %v1412_v48   ;;  %v792_v52 = vld [vmem:[%s2378_s4 + $0x8] sm:$0xff]  ;;  %v794_v2 = vld [vmem:[%s2378_s4 + $0x18] sm:$0xff] }
  0x29   :  { %v135_v7 = vsel %vm132_vm15, %v134_v63, %v130_v3  ;;  %v139_v8 = vmul.f32 %v120_v4, %v1872_v5  ;;  %v241_v31 = vadd.f32 %v1725_v17, %v240_v28  ;;  %v1531_v60 = vld [vmem:[%s2378_s4 + $0x20] sm:$0xff]  ;;  %v1532_v3 = vld [vmem:[%s2378_s4 + $0x28] sm:$0xff]  ;;  %v1533_v4 = vld [vmem:[%s2378_s4 + $0x30] sm:$0xff] }
  0x2a   :  { %v143_v58 = vpack.c.bf16 %v138_v54, %v1943_v53  ;;  %v140_v9 = vmul.f32 %v135_v7, %v1877_v6  ;;  %v329_v6 = vld [vmem:[%s2376_s3] sm:$0xff]  ;;  %723 = vmatpush.bf16.msrb.mxu1 %v1668_v30 }
  0x2b   :  { %335 = vperm.xlu0 %1697, %v329_v6   ;;  %v1964_v36 = vsel %vm242_vm0, %v1725_v17, %v241_v31  ;;  %v691_v62 = vld [vmem:[%s2379_s1] sm:$0xf]  ;;  %v1649_v17 = vld [vmem:[%s2383_s7 + $0x30] sm:$0xff] }
  0x2c   :  { %217 = vmatmul.bf16.vlgmr.msra.gmra.mxu0 %v143_v58  ;;  %v144_v12 = vpack.c.bf16 %v140_v9, %v139_v8  ;;  %v793_v58 = vld [vmem:[%s2378_s4 + $0x10] sm:$0xff]  ;;  %v692_v63 = vpack.c.bf16 %v691_v62, %v691_v62  ;;  %v1663_v6 = vld [vmem:[%s2383_s7 + $0xa0] sm:$0xff] }
  0x2d   :  { %v1702_v62 = vld [vmem:[%s2380_s14] ss:$0 sm:$0xff] }
  0x2e   :  { %724 = vmatpush.bf16.msrb.mxu1 %v1667_v34  ;;  %v1646_v34 = vld [vmem:[%s2383_s7 + $0x18] sm:$0xff] }
  0x2f   :  { %350 = vperm.xlu1 %1698, %v332_v51  }
  0x33   :  { %340 = vperm.xlu0 %1697, %v330_v39  }
  0x37   :  { %392 = vperm.xlu1 %1698, %v1415_v57  }
  0x3b   :  { %387 = vperm.xlu0 %1697, %v1414_v46  }
  0x3c   :  { %222 = vmatmul.bf16.gmra.mxu0 %v144_v12  ;;  %v1657_v12 = vld [vmem:[%s2383_s7 + $0x70] sm:$0xff] }
  0x3f   :  { %827 = vperm.xlu1 %1698, %v1531_v60   ;;  %v1670_v60 = vld [vmem:[%s2384_s15 + $0x8] sm:$0xff] }
  0x43   :  { %802 = vperm.xlu0 %1697, %v792_v52   ;;  %v1651_v52 = vld [vmem:[%s2383_s7 + $0x40] sm:$0xff] }
  0x47   :  { %812 = vperm.xlu1 %1698, %v794_v2   ;;  %v322_v2 = vlaneseq }
  0x4b   :  { %807 = vperm.xlu0 %1697, %v793_v58  }
  0x53   :  { %842 = vperm.xlu0 %1697, %v1534_v61  }
  0xa9   :  { %v218_v13 = vpop.f32.mrf.mxu0 }
  0xb1   :  { %v220_v14 = vpop.f32.mrf.mxu0 }
  0xb2   :  { %v228_v20 = vadd.f32 %v220_v14, %v218_v13  ;;  %v1650_v13 = vld [vmem:[%s2383_s7 + $0x38] sm:$0xff] }
  0xb3   :  { %v1666_v14 = vld [vmem:[%s2383_s7 + $0xb8] sm:$0xff]  ;;  %634 = vmatpush.bf16.msra.mxu2 %v1650_v13 }
  0xb4   :  { %672 = vmatpush.bf16.msrb.mxu0 %v1666_v14 }
  0xb7   :  { %635 = vmatpush.bf16.msra.mxu2 %v1649_v17 }
  0xb8   :  { %673 = vmatpush.bf16.msrb.mxu0 %v1665_v19 }
  0xb9   :  { %v223_v16 = vpop.f32.mrf.mxu0 }
  0xba   :  { %v229_v22 = vadd.f32 %v228_v20, %v223_v16  ;;  %v1656_v16 = vld [vmem:[%s2383_s7 + $0x68] sm:$0xff] }
  0xbc   :  { %674 = vmatpush.bf16.msrb.mxu0 %v1664_v24 }
  0xc0   :  { %675 = vmatpush.bf16.msrb.mxu0 %v1663_v6 }
  0xc1   :  { %v225_v23 = vpop.f32.mrf.mxu0 }
  0xc2   :  { %v230_v26 = vadd.f32 %v229_v22, %v225_v23  ;;  %v1655_v22 = vld [vmem:[%s2383_s7 + $0x60] sm:$0xff]  ;;  %v1648_v23 = vld [vmem:[%s2383_s7 + $0x28] sm:$0xff] }
  0xc3   :  { %636 = vmatpush.bf16.msra.mxu2 %v1648_v23 }
  0xc4   :  { %v231_v27 = vrot.slane %v230_v26, 4 }
  0xc6   :  { %v232_v29 = vadd.f32 %v231_v27, %v230_v26 }
  0xc8   :  { %v233_v5 = vrot.slane %v232_v29, 2 }
  0xca   :  { %v234_v33 = vadd.f32 %v233_v5, %v232_v29  ;;  %v1654_v29 = vld [vmem:[%s2383_s7 + $0x58] sm:$0xff]  ;;  %v1647_v5 = vld [vmem:[%s2383_s7 + $0x20] sm:$0xff] }
  0xcb   :  { %637 = vmatpush.bf16.msra.mxu2 %v1647_v5  ;;  %v1669_v5 = vld [vmem:[%s2384_s15] sm:$0xff] }
  0xcc   :  { %v235_v35 = vrot.slane %v234_v33, 1 }
  0xce   :  { %v236_v38 = vadd.f32 %v235_v35, %v234_v33  ;;  %v1662_v35 = vld [vmem:[%s2383_s7 + $0x98] sm:$0xff] }
  0xcf   :  { %638 = vmatpush.bf16.msra.mxu2 %v1646_v34  ;;  %676 = vmatpush.bf16.msrb.mxu0 %v1662_v35 }
  0xd0   :  { %v244_v40 = vmul.f32 %v1964_v36, %v236_v38 }
  0xd2   :  { %v1971_v41 = vsub.f32 %v1943_v53, %v244_v40  ;;  %v1973_v42 = vsub.f32 %v138_v54, %v244_v40  ;;  %v1988_v49 = vsub.f32 %v139_v8, %v244_v40  ;;  %v1990_v50 = vsub.f32 %v140_v9, %v244_v40  ;;  %v1413_v53 = vld [vmem:[%s2376_s3 + $0x28] sm:$0xff]  ;;  %v1658_v9 = vld [vmem:[%s2383_s7 + $0x78] sm:$0xff] }
  0xd3   :  { %382 = vperm.xlu2 %1699, %v1413_v53   ;;  %653 = vmatpush.bf16.msra.mxu3 %v1658_v9  ;;  %v1652_v40 = vld [vmem:[%s2383_s7 + $0x48] sm:$0xff] }
  0xd4   :  { %v249_v43 = vmul.f32 %v1971_v41, %v1971_v41  ;;  %v250_v44 = vmul.f32 %v1973_v42, %v1973_v42  ;;  %v251_v54 = vmul.f32 %v1988_v49, %v1988_v49  ;;  %v252_v55 = vmul.f32 %v1990_v50, %v1990_v50  ;;  %v1644_v53 = vld [vmem:[%s2383_s7 + $0x8] sm:$0xff] }
  0xd6   :  { %v253_v45 = vpack.c.bf16 %v250_v44, %v249_v43  ;;  %v254_v56 = vpack.c.bf16 %v252_v55, %v251_v54  ;;  %v1645_v44 = vld [vmem:[%s2383_s7 + $0x10] sm:$0xff]  ;;  %v1660_v54 = vld [vmem:[%s2383_s7 + $0x88] sm:$0xff]  ;;  %v1643_v55 = vld [vmem:[%s2383_s7] sm:$0xff] }
  0xd7   :  { %654 = vmatpush.bf16.msra.mxu3 %v1657_v12  ;;  %639 = vmatpush.bf16.msra.mxu2 %v1645_v44 }
  0xd8   :  { %263 = vmatmul.bf16.vlgmr.msra.gmra.mxu1 %v253_v45  ;;  %v1661_v45 = vld [vmem:[%s2383_s7 + $0x90] sm:$0xff] }
  0xd9   :  { %677 = vmatpush.bf16.msrb.mxu0 %v1661_v45 }
  0xdb   :  { %797 = vperm.xlu2 %1699, %v791_v59   ;;  %655 = vmatpush.bf16.msra.mxu3 %v1656_v16 }
  0xdc   :  { %640 = vmatpush.bf16.msra.mxu2 %v1644_v53 }
  0xdd   :  { %678 = vmatpush.bf16.msrb.mxu0 %v1660_v54 }
  0xdf   :  { %656 = vmatpush.bf16.msra.mxu3 %v1655_v22  ;;  %v2140_v22 = vpop.permute.xlu1 %345 }
  0xe0   :  { %641 = vmatpush.bf16.msra.mxu2 %v1643_v55 }
  0xe3   :  { %832 = vperm.xlu2 %1699, %v1532_v3   ;;  %657 = vmatpush.bf16.msra.mxu3 %v1654_v29  ;;  %v1700_v3 = vld [vmem:[%s2381_s5] ss:$0 sm:$0xff] }
  0xe4   :  { %780 = vmatpush.bf16.msrb.mxu2 %v1670_v60 }
  0xe7   :  { %658 = vmatpush.bf16.msra.mxu3 %v1653_v32 }
  0xe8   :  { %268 = vmatmul.bf16.gmra.mxu1 %v254_v56  ;;  %v1659_v56 = vld [vmem:[%s2383_s7 + $0x80] sm:$0xff]  ;;  %781 = vmatpush.bf16.msrb.mxu2 %v1669_v5 }
  0xe9   :  { %679 = vmatpush.bf16.msrb.mxu0 %v1659_v56 }
  0xeb   :  { %837 = vperm.xlu2 %1699, %v1533_v4   ;;  %659 = vmatpush.bf16.msra.mxu3 %v1652_v40  ;;  %v2170_v40 = vpop.permute.xlu1 %350 }
  0xed   :  { %981 = vmatpush.bf16.msra.mxu0 %v1849_v0 }
  0xef   :  { %660 = vmatpush.bf16.msra.mxu3 %v1651_v52 }
  0xf1   :  { %982 = vmatpush.bf16.msra.mxu0 %v1855_v1 }
  0xf3   :  { %942 = vmatpush.bf16.msrb.mxu3 %v1849_v0 }
  0xf5   :  { %983 = vmatpush.bf16.msra.mxu0 %v1886_v10 }
  0xf7   :  { %943 = vmatpush.bf16.msrb.mxu3 %v1855_v1  ;;  %v1701_v1 = vld [vmem:[%s2382_s6] ss:$0 sm:$0xff] }
  0xf8   :  { %1520 = vmatmul.msk.bf16.vlgmr.msrb.gmra.mxu1 %vm713_vm1, %v692_v63 }
  0xf9   :  { %984 = vmatpush.bf16.msra.mxu0 %v1893_v11 }
  0xfb   :  { %944 = vmatpush.bf16.msrb.mxu3 %v1886_v10  ;;  %v2136_v10 = vpop.permute.xlu2 %377 }
  0xfd   :  { %985 = vmatpush.bf16.msra.mxu0 %v1900_v18 }
  0xff   :  { %945 = vmatpush.bf16.msrb.mxu3 %v1893_v11 }
 0x101   :  { %986 = vmatpush.bf16.msra.mxu0 %v1911_v21 }
 0x103   :  { %946 = vmatpush.bf16.msrb.mxu3 %v1900_v18 }
 0x105   :  { %987 = vmatpush.bf16.msra.mxu0 %v1920_v25 }
 0x107   :  { %947 = vmatpush.bf16.msrb.mxu3 %v1911_v21 }
 0x109   :  { %988 = vmatpush.bf16.msra.mxu0 %v1928_v37 }
 0x10b   :  { %948 = vmatpush.bf16.msrb.mxu3 %v1920_v25 }
 0x10f   :  { %949 = vmatpush.bf16.msrb.mxu3 %v1928_v37 }
 0x12d   :  { %v2164_v34 = vpop.permute.xlu2 %382 }
 0x155   :  { %v264_v7 = vpop.f32.mrf.mxu1 }
 0x15d   :  { %v266_v8 = vpop.f32.mrf.mxu1 }
 0x15e   :  { %v274_v20 = vadd.f32 %v266_v8, %v264_v7  ;;  %v2124_v7 = vpop.permute.xlu0 %335 }
 0x165   :  { %v269_v15 = vpop.f32.mrf.mxu1 }
 0x166   :  { %v275_v26 = vadd.f32 %v274_v20, %v269_v15  ;;  %v2134_v15 = vshrl.u32 %v322_v2, 7  ;;  %v2157_v6 = vpop.permute.xlu0 %340 }
 0x168   :  { %vm324_vm5 = vcmp.lt.s32.totalorder %v2134_v15, 1  ;;  %vm365_vm6 = vcmp.lt.s32.totalorder %v2134_v15, 7 }
 0x16d   :  { %v271_v27 = vpop.f32.mrf.mxu1 }
 0x16e   :  { %v276_v28 = vadd.f32 %v275_v26, %v271_v27 }
 0x170   :  { %v277_v30 = vrot.slane %v276_v28, 4 }
 0x172   :  { %v278_v31 = vadd.f32 %v277_v30, %v276_v28 }
 0x174   :  { %v279_v33 = vrot.slane %v278_v31, 2 }
 0x175   :  { %v726_v38 = vpop.f32.mrf.mxu1 }
 0x176   :  { %v280_v39 = vadd.f32 %v279_v33, %v278_v31  ;;  %v2121_v4 = vadd.f32 %v1702_v62, %v726_v38 }
 0x178   :  { %v281_v43 = vrot.slane %v280_v39, 1  ;;  %v1521_v20 = vmul.f32 -1.442695, %v2121_v4 }
 0x17a   :  { %v282_v46 = vadd.f32 %v281_v43, %v280_v39 }
 0x17c   :  { %v283_v47 = vmul.f32 %v282_v46, %v1964_v36 }
 0x17d   :  { %v728_v48 = vpop.f32.mrf.mxu1 }
 0x17e   :  { %v284_v51 = vadd.f32 1e-05, %v283_v47 }
 0x180   :  { %1726 = vrsqrt.f32 %v284_v51  ;;  %vm291_vm3 = vweird.f32 %v284_v51 }
 0x181   :  { %1728 = vpow2.f32 %v1521_v20 }
 0x186   :  { %v1727_v57 = vpop.eup %1726 }
 0x187   :  { %v286_v58 = vmul.f32 %v1727_v57, %v284_v51  ;;  %vm292_vm2 = vweird.f32 %v1727_v57  ;;  %v1729_v35 = vpop.eup %1728 }
 0x188   :  { %vm293_vm4 = vmor %vm291_vm3, %vm292_vm2  ;;  %v2173_v47 = vadd.f32 1.0, %v1729_v35 }
 0x189   :  { %v287_v59 = vmul.f32 %v1727_v57, %v286_v58 }
 0x18a   :  { %1730 = vrcp.f32 %v2173_v47  ;;  %vm739_vm7 = vweird.f32 %v2173_v47 }
 0x18b   :  { %v288_v61 = vmul.f32 0.5, %v287_v59 }
 0x18d   :  { %v289_v63 = vsub.f32 1.5, %v288_v61 }
 0x18f   :  { %v290_v0 = vmul.f32 %v1727_v57, %v289_v63 }
 0x191   :  { %v294_v8 = vsel %vm293_vm4, %v1727_v57, %v290_v0  ;;  %v2187_v0 = vpop.permute.xlu0 %387 }
 0x192   :  { %v295_v9 = vmul.f32 %v294_v8, %v1971_v41  ;;  %v296_v12 = vmul.f32 %v294_v8, %v1973_v42  ;;  %v297_v13 = vmul.f32 %v294_v8, %v1988_v49  ;;  %v298_v14 = vmul.f32 %v294_v8, %v1990_v50  ;;  %v2193_v8 = vpop.permute.xlu1 %392 }
 0x194   :  { %v302_v16 = vmul.f32 %v1700_v3, %v295_v9  ;;  %v303_v17 = vmul.f32 %v1700_v3, %v296_v12  ;;  %v304_v19 = vmul.f32 %v1700_v3, %v297_v13  ;;  %v305_v41 = vmul.f32 %v1700_v3, %v298_v14  ;;  %v1731_v9 = vpop.eup %1730 }
 0x195   :  { %vm740_vm8 = vweird.f32 %v1731_v9 }
 0x196   :  { %v309_v42 = vadd.f32 %v1701_v1, %v302_v16  ;;  %v310_v49 = vadd.f32 %v1701_v1, %v303_v17  ;;  %v2142_v23 = vadd.f32 %v1701_v1, %v304_v19  ;;  %v2148_v26 = vadd.f32 %v1701_v1, %v305_v41  ;;  %vm741_vm9 = vmor %vm739_vm7, %vm740_vm8 }
 0x197   :  { %v735_v19 = vmul.f32 %v1731_v9, %v2173_v47 }
 0x198   :  { %v318_v50 = vrot.slane %v309_v42, 7  ;;  %v319_v24 = vrot.slane %v310_v49, 7  ;;  %v361_v11 = vrot.slane %v309_v42, 1  ;;  %v363_v28 = vrot.slane %v2142_v23, 1 }
 0x199   :  { %v362_v29 = vrot.slane %v310_v49, 1  ;;  %v314_v31 = vpack.c.bf16 %v309_v42, %v309_v42  ;;  %v321_v32 = vrot.slane %v2148_v26, 7  ;;  %v315_v39 = vpack.c.bf16 %v310_v49, %v310_v49 }
 0x19a   :  { %v327_v27 = vsel %vm324_vm5, %v318_v50, %v319_v24  ;;  %v364_v54 = vrot.slane %v2148_v26, 1  ;;  %v320_v59 = vrot.slane %v2142_v23, 7  ;;  %v316_v12 = vpack.c.bf16 %v2142_v23, %v2142_v23 }
 0x19b   :  { %v354_v18 = vmul.f32 %v2157_v6, %v327_v27  ;;  %v368_v30 = vsel %vm365_vm6, %v361_v11, %v362_v29  ;;  %v367_v38 = vsel %vm365_vm6, %v362_v29, %v363_v28  ;;  %v419_v46 = vunpack.c.l.b16 %v314_v31 }
 0x19c   :  { %v395_v33 = vmul.f32 %v2136_v10, %v368_v30  ;;  %v396_v45 = vmul.f32 %v2164_v34, %v367_v38  ;;  %v420_v48 = vunpack.c.l.b16 %v315_v39  ;;  %v328_v21 = vsel %vm324_vm5, %v321_v32, %v318_v50 }
 0x19d   :  { %v358_v44 = vpack.c.bf16 %v354_v18, %v354_v18  ;;  %v353_v53 = vmul.f32 %v2124_v7, %v328_v21  ;;  %v366_v25 = vsel %vm365_vm6, %v363_v28, %v364_v54  ;;  %v369_v62 = vsel %vm365_vm6, %v364_v54, %v361_v11 }
 0x19e   :  { %v399_v43 = vpack.c.bf16 %v395_v33, %v395_v33  ;;  %v400_v52 = vpack.c.bf16 %v396_v45, %v396_v45  ;;  %v423_v55 = vpack.c.b16 %v420_v48, %v419_v46  ;;  %v326_v2 = vsel %vm324_vm5, %v319_v24, %v320_v59 }
 0x19f   :  { %v408_v56 = vunpack.c.l.b16 %v358_v44  ;;  %v357_v58 = vpack.c.bf16 %v353_v53, %v353_v53  ;;  %v325_v3 = vsel %vm324_vm5, %v320_v59, %v321_v32  ;;  %v397_v37 = vmul.f32 %v2187_v0, %v366_v25  ;;  %v798_v53 = vpop.permute.xlu2 %797  ;;  %v1703_v59 = vld [vmem:[%s2385_s8] ss:$0 sm:$0xff] }
 0x1a0   :  { %v431_v51 = vunpack.c.l.b16 %v399_v43  ;;  %v432_v57 = vunpack.c.l.b16 %v400_v52  ;;  %661 = vmatmul.bf16.vlgmr.msra.gmra.mxu3 %v423_v55  ;;  %v398_v1 = vmul.f32 %v2193_v8, %v369_v62  ;;  %v317_v13 = vpack.c.bf16 %v2148_v26, %v2148_v26  ;;  %v803_v52 = vpop.permute.xlu0 %802 }
 0x1a1   :  { %v407_v60 = vunpack.c.l.b16 %v357_v58  ;;  %v355_v14 = vmul.f32 %v2140_v22, %v326_v2  ;;  %v356_v16 = vmul.f32 %v2170_v40, %v325_v3  ;;  %v401_v17 = vpack.c.bf16 %v397_v37, %v397_v37 }
 0x1a2   :  { %v435_v61 = vpack.c.b16 %v432_v57, %v431_v51  ;;  %v402_v20 = vpack.c.bf16 %v398_v1, %v398_v1  ;;  %v421_v41 = vunpack.c.l.b16 %v316_v12  ;;  %v422_v42 = vunpack.c.l.b16 %v317_v13 }
 0x1a3   :  { %v411_v63 = vpack.c.b16 %v408_v56, %v407_v60  ;;  %v359_v49 = vpack.c.bf16 %v355_v14, %v355_v14  ;;  %v360_v50 = vpack.c.bf16 %v356_v16, %v356_v16  ;;  %v433_v24 = vunpack.c.l.b16 %v401_v17  ;;  %v1704_v56 = vld [vmem:[%s2386_s16] ss:$0 sm:$0xff] }
 0x1a4   :  { %680 = vmatmul.bf16.vlgmr.msrb.gmra.mxu0 %v435_v61  ;;  %v736_v11 = vsub.f32 1.0, %v735_v19  ;;  %v434_v27 = vunpack.c.l.b16 %v402_v20  ;;  %v424_v28 = vpack.c.b16 %v422_v42, %v421_v41  ;;  %v745_v30 = vand.u32 2147483648, %v2173_v47 }
 0x1a5   :  { %642 = vmatmul.bf16.vlgmr.msra.gmra.mxu2 %v411_v63  ;;  %v409_v23 = vunpack.c.l.b16 %v359_v49  ;;  %v410_v29 = vunpack.c.l.b16 %v360_v50  ;;  %v743_v32 = vand.u32 2147483647, %v2173_v47 }
 0x1a6   :  { %v737_v26 = vmul.f32 %v1731_v9, %v736_v11  ;;  %v436_v5 = vpack.c.b16 %v434_v27, %v433_v24  ;;  %v746_v33 = vor.u32 1.1754944e-38, %v745_v30 }
 0x1a7   :  { %v412_v18 = vpack.c.b16 %v410_v29, %v409_v23  ;;  %vm744_vm10 = vcmp.eq.f32.partialorder %v743_v32, 8.507059e+37  ;;  %v833_v58 = vpop.permute.xlu2 %832 }
 0x1a8   :  { %v738_v31 = vadd.f32 %v1731_v9, %v737_v26  ;;  %v808_v57 = vpop.permute.xlu0 %807 }
 0x1aa   :  { %v742_v35 = vsel %vm741_vm9, %v1731_v9, %v738_v31 }
 0x1ab   :  { %v747_v38 = vsel %vm744_vm10, %v746_v33, %v742_v35 }
 0x1ac   :  { %v749_v39 = vmul.f32 %v747_v38, %v2121_v4  ;;  %v828_v4 = vpop.permute.xlu1 %827 }
 0x1ae   :  { %v750_v43 = vpack.c.bf16 %v749_v39, %v749_v39 }
 0x1af   :  { %v838_v49 = vpop.permute.xlu2 %837 }
 0x1b0   :  { %666 = vmatmul.bf16.gmra.mxu3 %v424_v28  ;;  %v843_v17 = vpop.permute.xlu0 %842 }
 0x1b4   :  { %685 = vmatmul.bf16.gmra.mxu0 %v436_v5  ;;  %v813_v42 = vpop.permute.xlu1 %812 }
 0x1b5   :  { %647 = vmatmul.bf16.gmra.mxu2 %v412_v18 }
 0x1c5   :  { %1530 = vmatmul.msk.bf16.vlgmr.msrb.gmra.mxu2 %vm713_vm1, %v750_v43 }
 0x221   :  { %v681_v48 = vpop.f32.mrf.mxu0 }
 0x223   :  { %v662_v46 = vpop.f32.mrf.mxu3 }
 0x228   :  { %v643_v44 = vpop.f32.mrf.mxu2 }
 0x229   :  { %v683_v47 = vpop.f32.mrf.mxu0  ;;  %v644_v62 = vadd.f32 %v1703_v59, %v643_v44 }
 0x22b   :  { %v664_v51 = vpop.f32.mrf.mxu3  ;;  %v663_v9 = vadd.f32 %v662_v46, %v644_v62 }
 0x22d   :  { %v682_v5 = vadd.f32 %v681_v48, %v663_v9 }
 0x230   :  { %v645_v45 = vpop.f32.mrf.mxu2 }
 0x231   :  { %v686_v61 = vpop.f32.mrf.mxu0  ;;  %v646_v63 = vadd.f32 %v1703_v59, %v645_v45 }
 0x233   :  { %v667_v55 = vpop.f32.mrf.mxu3  ;;  %v665_v12 = vadd.f32 %v664_v51, %v646_v63 }
 0x235   :  { %v684_v18 = vadd.f32 %v683_v47, %v665_v12 }
 0x238   :  { %v648_v21 = vpop.f32.mrf.mxu2 }
 0x239   :  { %v649_v3 = vadd.f32 %v1703_v59, %v648_v21  ;;  %v688_v30 = vpop.f32.mrf.mxu0 }
 0x23b   :  { %v669_v13 = vpop.f32.mrf.mxu3  ;;  %v668_v19 = vadd.f32 %v667_v55, %v649_v3 }
 0x23d   :  { %v687_v33 = vadd.f32 %v686_v61, %v668_v19 }
 0x240   :  { %v650_v54 = vpop.f32.mrf.mxu2 }
 0x241   :  { %v651_v37 = vadd.f32 %v1703_v59, %v650_v54 }
 0x243   :  { %v670_v20 = vadd.f32 %v669_v13, %v651_v37 }
 0x245   :  { %v689_v35 = vadd.f32 %v688_v30, %v670_v20 }
 0x248   :  { %v783_v60 = vpop.f32.mrf.mxu2 }
 0x249   :  { %v784_v25 = vadd.f32 %v1704_v56, %v783_v60 }
 0x24b   :  { %v788_v2 = vrot.slane %v784_v25, 2 }
 0x24d   :  { %v790_v1 = vadd.f32 %v788_v2, %v784_v25 }
 0x24f   :  { %v815_v14 = vperm.slane %v790_v1, 0  ;;  %v845_v16 = vperm.slane %v790_v1, 1 }
 0x250   :  { %v785_v41 = vpop.f32.mrf.mxu2 }
 0x251   :  { %v816_v50 = vmul.f32 %v815_v14, %v798_v53  ;;  %v817_v24 = vmul.f32 %v815_v14, %v803_v52  ;;  %v846_v11 = vmul.f32 %v845_v16, %v828_v4  ;;  %v847_v27 = vmul.f32 %v845_v16, %v833_v58 }
 0x252   :  { %v818_v28 = vmul.f32 %v815_v14, %v808_v57  ;;  %v819_v23 = vmul.f32 %v815_v14, %v813_v42  ;;  %v848_v29 = vmul.f32 %v845_v16, %v838_v49  ;;  %v849_v26 = vmul.f32 %v845_v16, %v843_v17 }
 0x253   :  { %v850_v31 = vadd.f32 %v846_v11, %v816_v50  ;;  %v851_v32 = vadd.f32 %v847_v27, %v817_v24 }
 0x254   :  { %v852_v38 = vadd.f32 %v848_v29, %v818_v28  ;;  %v853_v39 = vadd.f32 %v849_v26, %v819_v23 }
 0x255   :  { %v854_v43 = vadd.f32 %v850_v31, %v682_v5  ;;  %v855_v44 = vadd.f32 %v851_v32, %v684_v18 }
 0x256   :  { %v2215_v45 = vadd.f32 %v852_v38, %v687_v33  ;;  %v2217_v46 = vadd.f32 %v853_v39, %v689_v35 }
 0x257   :  { %v1535_v21 = vmul.f32 -1.442695, %v854_v43  ;;  %v1536_v51 = vmul.f32 -1.442695, %v855_v44 }
 0x258   :  { %v1537_v52 = vmul.f32 -1.442695, %v2215_v45  ;;  %v1538_v48 = vmul.f32 -1.442695, %v2217_v46 }
 0x259   :  { %1732 = vpow2.f32 %v1535_v21 }
 0x25a   :  { %1734 = vpow2.f32 %v1536_v51 }
 0x25b   :  { %1736 = vpow2.f32 %v1537_v52 }
 0x25c   :  { %1738 = vpow2.f32 %v1538_v48 }
 0x25f   :  { %v1733_v53 = vpop.eup %1732 }
 0x260   :  { %v1735_v47 = vpop.eup %1734  ;;  %v870_v54 = vadd.f32 1.0, %v1733_v53 }
 0x261   :  { %v1737_v55 = vpop.eup %1736  ;;  %v871_v56 = vadd.f32 1.0, %v1735_v47 }
 0x262   :  { %v1739_v57 = vpop.eup %1738  ;;  %1740 = vrcp.f32 %v870_v54  ;;  %v872_v4 = vadd.f32 1.0, %v1737_v55  ;;  %v883_v2 = vand.u32 2147483647, %v870_v54  ;;  %v885_v3 = vand.u32 2147483648, %v870_v54 }
 0x263   :  { %1742 = vrcp.f32 %v871_v56  ;;  %v873_v58 = vadd.f32 1.0, %v1739_v57  ;;  %v900_v12 = vand.u32 2147483648, %v871_v56  ;;  %v898_v16 = vand.u32 2147483647, %v871_v56 }
 0x264   :  { %1744 = vrcp.f32 %v872_v4  ;;  %vm879_vm13 = vweird.f32 %v870_v54  ;;  %vm894_vm14 = vweird.f32 %v871_v56  ;;  %v886_v20 = vor.u32 1.1754944e-38, %v885_v3 }
 0x265   :  { %1746 = vrcp.f32 %v873_v58  ;;  %vm884_vm0 = vcmp.eq.f32.partialorder %v883_v2, 8.507059e+37  ;;  %v901_v24 = vor.u32 1.1754944e-38, %v900_v12  ;;  %vm899_vm2 = vcmp.eq.f32.partialorder %v898_v16, 8.507059e+37 }
 0x266   :  { %vm909_vm7 = vweird.f32 %v872_v4  ;;  %v915_v32 = vand.u32 2147483648, %v872_v4  ;;  %v930_v33 = vand.u32 2147483648, %v873_v58  ;;  %v913_v35 = vand.u32 2147483647, %v872_v4 }
 0x267   :  { %vm924_vm9 = vweird.f32 %v873_v58  ;;  %v928_v38 = vand.u32 2147483647, %v873_v58 }
 0x268   :  { %v1741_v59 = vpop.eup %1740 }
 0x269   :  { %v1743_v60 = vpop.eup %1742  ;;  %v875_v61 = vmul.f32 %v1741_v59, %v870_v54  ;;  %vm880_vm11 = vweird.f32 %v1741_v59 }
 0x26a   :  { %v890_v25 = vmul.f32 %v1743_v60, %v871_v56  ;;  %v1745_v63 = vpop.eup %1744  ;;  %vm895_vm12 = vweird.f32 %v1743_v60  ;;  %vm881_vm15 = vmor %vm879_vm13, %vm880_vm11  ;;  %vm914_vm11 = vcmp.eq.f32.partialorder %v913_v35, 8.507059e+37 }
 0x26b   :  { %v876_v62 = vsub.f32 1.0, %v875_v61  ;;  %v1747_v1 = vpop.eup %1746  ;;  %v905_v13 = vmul.f32 %v1745_v63, %v872_v4  ;;  %vm896_vm1 = vmor %vm894_vm14, %vm895_vm12  ;;  %vm910_vm3 = vweird.f32 %v1745_v63  ;;  %vm929_vm12 = vcmp.eq.f32.partialorder %v928_v38, 8.507059e+37  ;;  %v1691_v38 = vld [vmem:[%s2390_s11 + $0xa0] sm:$0xff] }
 0x26c   :  { %v891_v37 = vsub.f32 1.0, %v890_v25  ;;  %v920_v17 = vmul.f32 %v1747_v1, %v873_v58  ;;  %vm925_vm4 = vweird.f32 %v1747_v1  ;;  %vm911_vm8 = vmor %vm909_vm7, %vm910_vm3 }
 0x26d   :  { %v877_v9 = vmul.f32 %v1741_v59, %v876_v62  ;;  %v906_v42 = vsub.f32 1.0, %v905_v13  ;;  %vm926_vm10 = vmor %vm924_vm9, %vm925_vm4 }
 0x26e   :  { %v892_v14 = vmul.f32 %v1743_v60, %v891_v37  ;;  %v921_v49 = vsub.f32 1.0, %v920_v17 }
 0x26f   :  { %v878_v19 = vadd.f32 %v1741_v59, %v877_v9  ;;  %v907_v26 = vmul.f32 %v1745_v63, %v906_v42 }
 0x270   :  { %v893_v41 = vadd.f32 %v1743_v60, %v892_v14  ;;  %v922_v5 = vmul.f32 %v1747_v1, %v921_v49  ;;  %v1685_v49 = vld [vmem:[%s2390_s11 + $0x70] sm:$0xff] }
 0x271   :  { %v882_v50 = vsel %vm881_vm15, %v1741_v59, %v878_v19  ;;  %v908_v30 = vadd.f32 %v1745_v63, %v907_v26 }
 0x272   :  { %v887_v11 = vsel %vm884_vm0, %v886_v20, %v882_v50  ;;  %v897_v27 = vsel %vm896_vm1, %v1743_v60, %v893_v41  ;;  %v923_v31 = vadd.f32 %v1747_v1, %v922_v5  ;;  %v1686_v41 = vld [vmem:[%s2390_s11 + $0x78] sm:$0xff]  ;;  %v1683_v5 = vld [vmem:[%s2390_s11 + $0x60] sm:$0xff] }
 0x273   :  { %v902_v28 = vsel %vm899_vm2, %v901_v24, %v897_v27  ;;  %v934_v23 = vmul.f32 %v887_v11, %v854_v43  ;;  %v912_v39 = vsel %vm911_vm8, %v1745_v63, %v908_v30  ;;  %v916_v43 = vor.u32 1.1754944e-38, %v915_v32  ;;  %1326 = vmatpush.bf16.msra.mxu2 %v1686_v41  ;;  %v1694_v50 = vld [vmem:[%s2390_s11 + $0xb8] sm:$0xff]  ;;  %v1684_v11 = vld [vmem:[%s2390_s11 + $0x68] sm:$0xff] }
 0x274   :  { %v935_v29 = vmul.f32 %v902_v28, %v855_v44  ;;  %v927_v21 = vsel %vm926_vm10, %v1747_v1, %v923_v31  ;;  %v931_v44 = vor.u32 1.1754944e-38, %v930_v33  ;;  %v1678_v24 = vld [vmem:[%s2390_s11 + $0x38] sm:$0xff]  ;;  %1345 = vmatpush.bf16.msra.mxu3 %v1694_v50  ;;  %v1693_v28 = vld [vmem:[%s2390_s11 + $0xb0] sm:$0xff]  ;;  %v1692_v30 = vld [vmem:[%s2390_s11 + $0xa8] sm:$0xff] }
 0x275   :  { %v917_v51 = vsel %vm914_vm11, %v916_v43, %v912_v39  ;;  %1307 = vmatpush.bf16.msra.mxu1 %v1678_v24  ;;  %v1676_v31 = vld [vmem:[%s2390_s11 + $0x28] sm:$0xff]  ;;  %v1682_v33 = vld [vmem:[%s2390_s11 + $0x58] sm:$0xff]  ;;  %v1675_v39 = vld [vmem:[%s2390_s11 + $0x20] sm:$0xff] }
 0x276   :  { %v940_v18 = vpack.c.bf16 %v935_v29, %v934_v23  ;;  %v932_v52 = vsel %vm929_vm12, %v931_v44, %v927_v21  ;;  %v936_v48 = vmul.f32 %v917_v51, %v2215_v45  ;;  %v1681_v21 = vld [vmem:[%s2390_s11 + $0x50] sm:$0xff]  ;;  %v1690_v44 = vld [vmem:[%s2390_s11 + $0x98] sm:$0xff] }
 0x277   :  { %v937_v53 = vmul.f32 %v932_v52, %v2217_v46  ;;  %1327 = vmatpush.bf16.msra.mxu2 %v1685_v49  ;;  %v1674_v51 = vld [vmem:[%s2390_s11 + $0x18] sm:$0xff] }
 0x278   :  { %950 = vmatmul.bf16.vlgmr.msrb.gmra.mxu3 %v940_v18 }
 0x279   :  { %v941_v47 = vpack.c.bf16 %v937_v53, %v936_v48  ;;  %1346 = vmatpush.bf16.msra.mxu3 %v1693_v28 }
 0x27b   :  { %1328 = vmatpush.bf16.msra.mxu2 %v1684_v11 }
 0x27d   :  { %1347 = vmatpush.bf16.msra.mxu3 %v1692_v30 }
 0x27f   :  { %1329 = vmatpush.bf16.msra.mxu2 %v1683_v5 }
 0x281   :  { %1348 = vmatpush.bf16.msra.mxu3 %v1691_v38 }
 0x283   :  { %1330 = vmatpush.bf16.msra.mxu2 %v1682_v33 }
 0x285   :  { %1349 = vmatpush.bf16.msra.mxu3 %v1690_v44 }
 0x287   :  { %1331 = vmatpush.bf16.msra.mxu2 %v1681_v21 }
 0x288   :  { %955 = vmatmul.bf16.gmra.mxu3 %v941_v47  ;;  %v1689_v47 = vld [vmem:[%s2390_s11 + $0x90] sm:$0xff] }
 0x289   :  { %1350 = vmatpush.bf16.msra.mxu3 %v1689_v47 }
 0x2fb   :  { %v951_v54 = vpop.f32.mrf.mxu3 }
 0x303   :  { %v953_v55 = vpop.f32.mrf.mxu3 }
 0x304   :  { %v961_v57 = vadd.f32 %v953_v55, %v951_v54  ;;  %v1673_v54 = vld [vmem:[%s2390_s11 + $0x10] sm:$0xff] }
 0x30b   :  { %v956_v56 = vpop.f32.mrf.mxu3 }
 0x30c   :  { %v962_v4 = vadd.f32 %v961_v57, %v956_v56  ;;  %v1679_v56 = vld [vmem:[%s2390_s11 + $0x40] sm:$0xff] }
 0x313   :  { %v958_v58 = vpop.f32.mrf.mxu3 }
 0x314   :  { %v963_v59 = vadd.f32 %v962_v4, %v958_v58  ;;  %v1688_v4 = vld [vmem:[%s2390_s11 + $0x88] sm:$0xff] }
 0x315   :  { %v1672_v58 = vld [vmem:[%s2390_s11 + $0x8] sm:$0xff]  ;;  %1351 = vmatpush.bf16.msra.mxu3 %v1688_v4 }
 0x316   :  { %v964_v60 = vrot.slane %v963_v59, 4 }
 0x318   :  { %v965_v61 = vadd.f32 %v964_v60, %v963_v59  ;;  %v1687_v60 = vld [vmem:[%s2390_s11 + $0x80] sm:$0xff] }
 0x319   :  { %1352 = vmatpush.bf16.msra.mxu3 %v1687_v60 }
 0x31a   :  { %v966_v25 = vrot.slane %v965_v61, 2 }
 0x31c   :  { %v967_v62 = vadd.f32 %v966_v25, %v965_v61 }
 0x31e   :  { %v968_v63 = vrot.slane %v967_v62, 1 }
 0x320   :  { %v969_v2 = vadd.f32 %v968_v63, %v967_v62 }
 0x322   :  { %v970_v3 = vmul.f32 %v969_v2, %v1964_v36 }
 0x324   :  { %v2224_v45 = vsub.f32 %v934_v23, %v970_v3  ;;  %v2226_v46 = vsub.f32 %v935_v29, %v970_v3  ;;  %v2232_v12 = vsub.f32 %v936_v48, %v970_v3  ;;  %v2234_v13 = vsub.f32 %v937_v53, %v970_v3  ;;  %v1677_v23 = vld [vmem:[%s2390_s11 + $0x30] sm:$0xff]  ;;  %v1680_v48 = vld [vmem:[%s2390_s11 + $0x48] sm:$0xff] }
 0x325   :  { %1308 = vmatpush.bf16.msra.mxu1 %v1677_v23  ;;  %1332 = vmatpush.bf16.msra.mxu2 %v1680_v48 }
 0x326   :  { %v975_v37 = vmul.f32 %v2224_v45, %v2224_v45  ;;  %v976_v1 = vmul.f32 %v2226_v46, %v2226_v46  ;;  %v977_v14 = vmul.f32 %v2232_v12, %v2232_v12  ;;  %v978_v16 = vmul.f32 %v2234_v13, %v2234_v13 }
 0x328   :  { %v979_v9 = vpack.c.bf16 %v976_v1, %v975_v37  ;;  %v980_v17 = vpack.c.bf16 %v978_v16, %v977_v14  ;;  %v1705_v37 = vld [vmem:[%s2387_s9] ss:$0 sm:$0xff] }
 0x329   :  { %1309 = vmatpush.bf16.msra.mxu1 %v1676_v31  ;;  %1333 = vmatpush.bf16.msra.mxu2 %v1679_v56 }
 0x32a   :  { %989 = vmatmul.bf16.vlgmr.msra.gmra.mxu0 %v979_v9 }
 0x32d   :  { %1310 = vmatpush.bf16.msra.mxu1 %v1675_v39 }
 0x331   :  { %1311 = vmatpush.bf16.msra.mxu1 %v1674_v51 }
 0x335   :  { %1312 = vmatpush.bf16.msra.mxu1 %v1673_v54 }
 0x339   :  { %1313 = vmatpush.bf16.msra.mxu1 %v1672_v58 }
 0x33a   :  { %994 = vmatmul.bf16.gmra.mxu0 %v980_v17 }
 0x3a7   :  { %v990_v19 = vpop.f32.mrf.mxu0 }
 0x3af   :  { %v992_v20 = vpop.f32.mrf.mxu0 }
 0x3b0   :  { %v1000_v27 = vadd.f32 %v992_v20, %v990_v19  ;;  %v1706_v19 = vld [vmem:[%s2388_s10] ss:$0 sm:$0xff] }
 0x3b7   :  { %v995_v42 = vpop.f32.mrf.mxu0 }
 0x3b8   :  { %v1001_v29 = vadd.f32 %v1000_v27, %v995_v42 }
 0x3bf   :  { %v997_v26 = vpop.f32.mrf.mxu0 }
 0x3c0   :  { %v1002_v18 = vadd.f32 %v1001_v29, %v997_v26 }
 0x3c2   :  { %v1003_v32 = vrot.slane %v1002_v18, 4 }
 0x3c4   :  { %v1004_v35 = vadd.f32 %v1003_v32, %v1002_v18 }
 0x3c6   :  { %v1005_v43 = vrot.slane %v1004_v35, 2 }
 0x3c8   :  { %v1006_v52 = vadd.f32 %v1005_v43, %v1004_v35 }
 0x3ca   :  { %v1007_v53 = vrot.slane %v1006_v52, 1 }
 0x3cc   :  { %v1008_v55 = vadd.f32 %v1007_v53, %v1006_v52 }
 0x3ce   :  { %v1009_v57 = vmul.f32 %v1008_v55, %v1964_v36  ;;  %v1671_v36 = vld [vmem:[%s2390_s11] sm:$0xff] }
 0x3cf   :  { %1314 = vmatpush.bf16.msra.mxu1 %v1671_v36 }
 0x3d0   :  { %v1010_v59 = vadd.f32 1e-05, %v1009_v57 }
 0x3d2   :  { %1748 = vrsqrt.f32 %v1010_v59  ;;  %vm1017_vm14 = vweird.f32 %v1010_v59 }
 0x3d8   :  { %v1749_v61 = vpop.eup %1748 }
 0x3d9   :  { %v1012_v25 = vmul.f32 %v1749_v61, %v1010_v59  ;;  %vm1018_vm13 = vweird.f32 %v1749_v61 }
 0x3da   :  { %vm1019_vm15 = vmor %vm1017_vm14, %vm1018_vm13 }
 0x3db   :  { %v1013_v62 = vmul.f32 %v1749_v61, %v1012_v25 }
 0x3dd   :  { %v1014_v63 = vmul.f32 0.5, %v1013_v62 }
 0x3df   :  { %v1015_v2 = vsub.f32 1.5, %v1014_v63 }
 0x3e1   :  { %v1016_v3 = vmul.f32 %v1749_v61, %v1015_v2 }
 0x3e3   :  { %v1020_v1 = vsel %vm1019_vm15, %v1749_v61, %v1016_v3 }
 0x3e4   :  { %v1023_v9 = vmul.f32 %v1020_v1, %v2232_v12  ;;  %v1024_v14 = vmul.f32 %v1020_v1, %v2234_v13  ;;  %v1021_v16 = vmul.f32 %v1020_v1, %v2224_v45  ;;  %v1022_v17 = vmul.f32 %v1020_v1, %v2226_v46 }
 0x3e6   :  { %v1028_v20 = vmul.f32 %v1705_v37, %v1021_v16  ;;  %v1029_v41 = vmul.f32 %v1705_v37, %v1022_v17  ;;  %v1031_v42 = vmul.f32 %v1705_v37, %v1024_v14  ;;  %v1030_v49 = vmul.f32 %v1705_v37, %v1023_v9 }
 0x3e8   :  { %v1035_v50 = vadd.f32 %v1706_v19, %v1028_v20  ;;  %v1036_v24 = vadd.f32 %v1706_v19, %v1029_v41  ;;  %v1038_v11 = vadd.f32 %v1706_v19, %v1031_v42  ;;  %v1037_v27 = vadd.f32 %v1706_v19, %v1030_v49 }
 0x3ea   :  { %v1040_v28 = vpack.c.bf16 %v1035_v50, %v1035_v50  ;;  %v1041_v12 = vpack.c.bf16 %v1036_v24, %v1036_v24  ;;  %v1044_v23 = vrot.slane %v1035_v50, 7  ;;  %v1045_v13 = vrot.slane %v1036_v24, 7 }
 0x3eb   :  { %v1047_v29 = vrot.slane %v1038_v11, 7  ;;  %v1060_v45 = vrot.slane %v1035_v50, 1  ;;  %v1061_v26 = vrot.slane %v1036_v24, 1  ;;  %v1062_v46 = vrot.slane %v1037_v27, 1 }
 0x3ec   :  { %v1092_v5 = vunpack.c.l.b16 %v1040_v28  ;;  %v1093_v18 = vunpack.c.l.b16 %v1041_v12  ;;  %v1050_v30 = vsel %vm324_vm5, %v1044_v23, %v1045_v13  ;;  %v1063_v47 = vrot.slane %v1038_v11, 1 }
 0x3ed   :  { %v1051_v31 = vsel %vm324_vm5, %v1047_v29, %v1044_v23  ;;  %v1053_v32 = vmul.f32 %v1050_v30, %v2157_v6  ;;  %v1065_v33 = vsel %vm365_vm6, %v1061_v26, %v1062_v46  ;;  %v1066_v35 = vsel %vm365_vm6, %v1060_v45, %v1061_v26 }
 0x3ee   :  { %v1096_v38 = vpack.c.b16 %v1093_v18, %v1092_v5  ;;  %v1052_v39 = vmul.f32 %v1051_v31, %v2124_v7  ;;  %v1068_v21 = vmul.f32 %v1066_v35, %v2136_v10  ;;  %v1069_v43 = vmul.f32 %v1065_v33, %v2164_v34 }
 0x3ef   :  { %v1057_v44 = vpack.c.bf16 %v1053_v32, %v1053_v32  ;;  %v1046_v6 = vrot.slane %v1037_v27, 7  ;;  %v1064_v34 = vsel %vm365_vm6, %v1062_v46, %v1063_v47  ;;  %v1067_v58 = vsel %vm365_vm6, %v1063_v47, %v1060_v45 }
 0x3f0   :  { %1334 = vmatmul.bf16.vlgmr.msra.gmra.mxu2 %v1096_v38  ;;  %v1056_v51 = vpack.c.bf16 %v1052_v39, %v1052_v39  ;;  %v1072_v52 = vpack.c.bf16 %v1068_v21, %v1068_v21  ;;  %v1073_v48 = vpack.c.bf16 %v1069_v43, %v1069_v43  ;;  %v1042_v59 = vpack.c.bf16 %v1037_v27, %v1037_v27  ;;  %v1750_v27 = vld [vmem:[%s2397_s30] sm:$0xff] }
 0x3f1   :  { %v1081_v53 = vunpack.c.l.b16 %v1057_v44  ;;  %v1048_v7 = vsel %vm324_vm5, %v1046_v6, %v1047_v29  ;;  %v1049_v10 = vsel %vm324_vm5, %v1045_v13, %v1046_v6  ;;  %v1043_v60 = vpack.c.bf16 %v1038_v11, %v1038_v11 }
 0x3f2   :  { %v1080_v54 = vunpack.c.l.b16 %v1056_v51  ;;  %v1104_v55 = vunpack.c.l.b16 %v1072_v52  ;;  %v1105_v56 = vunpack.c.l.b16 %v1073_v48  ;;  %v1054_v36 = vmul.f32 %v1049_v10, %v2140_v22 }
 0x3f3   :  { %v1055_v61 = vmul.f32 %v1048_v7, %v2170_v40  ;;  %v1070_v25 = vmul.f32 %v1064_v34, %v2187_v0  ;;  %v1071_v62 = vmul.f32 %v1067_v58, %v2193_v8  ;;  %v1094_v63 = vunpack.c.l.b16 %v1042_v59  ;;  %v1707_v40 = vld [vmem:[%s2389_s12] ss:$0 sm:$0xff] }
 0x3f4   :  { %v1084_v57 = vpack.c.b16 %v1081_v53, %v1080_v54  ;;  %v1108_v4 = vpack.c.b16 %v1105_v56, %v1104_v55  ;;  %v1095_v2 = vunpack.c.l.b16 %v1043_v60  ;;  %v1058_v3 = vpack.c.bf16 %v1054_v36, %v1054_v36 }
 0x3f5   :  { %v1059_v37 = vpack.c.bf16 %v1055_v61, %v1055_v61  ;;  %v1074_v1 = vpack.c.bf16 %v1070_v25, %v1070_v25  ;;  %v1075_v9 = vpack.c.bf16 %v1071_v62, %v1071_v62 }
 0x3f6   :  { %1315 = vmatmul.bf16.vlgmr.msra.gmra.mxu1 %v1084_v57  ;;  %1353 = vmatmul.bf16.vlgmr.msra.gmra.mxu3 %v1108_v4  ;;  %v1097_v15 = vpack.c.b16 %v1095_v2, %v1094_v63  ;;  %v1082_v14 = vunpack.c.l.b16 %v1058_v3 }
 0x3f7   :  { %v1083_v16 = vunpack.c.l.b16 %v1059_v37  ;;  %v1106_v17 = vunpack.c.l.b16 %v1074_v1  ;;  %v1107_v19 = vunpack.c.l.b16 %v1075_v9 }
 0x3f9   :  { %v1085_v20 = vpack.c.b16 %v1083_v16, %v1082_v14  ;;  %v1109_v22 = vpack.c.b16 %v1107_v19, %v1106_v17 }
 0x400   :  { %1339 = vmatmul.bf16.gmra.mxu2 %v1097_v15 }
 0x406   :  { %1320 = vmatmul.bf16.gmra.mxu1 %v1085_v20  ;;  %1358 = vmatmul.bf16.gmra.mxu3 %v1109_v22 }
 0x473   :  { %v1316_v0 = vpop.f32.mrf.mxu1  ;;  %v1335_v8 = vpop.f32.mrf.mxu2 }
 0x474   :  { %v1317_v41 = vadd.f32 %v1707_v40, %v1316_v0 }
 0x476   :  { %v1336_v42 = vadd.f32 %v1335_v8, %v1317_v41 }
 0x479   :  { %v1354_v49 = vpop.f32.mrf.mxu3 }
 0x47a   :  { %v1355_v50 = vadd.f32 %v1354_v49, %v1336_v42 }
 0x47b   :  { %v1318_v24 = vpop.f32.mrf.mxu1  ;;  %v1337_v11 = vpop.f32.mrf.mxu2 }
 0x47c   :  { %v1364_v28 = vadd.f32 %v1750_v27, %v1355_v50  ;;  %v1319_v12 = vadd.f32 %v1707_v40, %v1318_v24 }
 0x47e   :  { %1368 = vst [vmem:[%s2391_s17] sm:$0xff] %v1364_v28  ;;  %v1338_v23 = vadd.f32 %v1337_v11, %v1319_v12 }
 0x481   :  { %v1356_v13 = vpop.f32.mrf.mxu3 }
 0x482   :  { %v1357_v29 = vadd.f32 %v1356_v13, %v1338_v23 }
 0x483   :  { %v1321_v45 = vpop.f32.mrf.mxu1  ;;  %v1340_v26 = vpop.f32.mrf.mxu2 }
 0x484   :  { %v1322_v18 = vadd.f32 %v1707_v40, %v1321_v45 }
 0x485   :  { %v1751_v46 = vld [vmem:[%s2397_s30 + $0x8] sm:$0xff] }
 0x486   :  { %v1365_v5 = vadd.f32 %v1751_v46, %v1357_v29  ;;  %v1341_v30 = vadd.f32 %v1340_v26, %v1322_v18 }
 0x488   :  { %1369 = vst [vmem:[%s2391_s17 + $0x8] sm:$0xff] %v1365_v5 }
 0x489   :  { %v1359_v31 = vpop.f32.mrf.mxu3 }
 0x48a   :  { %v1360_v32 = vadd.f32 %v1359_v31, %v1341_v30 }
 0x48b   :  { %v1323_v33 = vpop.f32.mrf.mxu1  ;;  %v1342_v21 = vpop.f32.mrf.mxu2 }
 0x48c   :  { %v1324_v39 = vadd.f32 %v1707_v40, %v1323_v33 }
 0x48e   :  { %v1343_v43 = vadd.f32 %v1342_v21, %v1324_v39 }
 0x48f   :  { %v1752_v35 = vld [vmem:[%s2397_s30 + $0x10] sm:$0xff] }
 0x490   :  { %v1366_v38 = vadd.f32 %v1752_v35, %v1360_v32 }
 0x491   :  { %v1361_v44 = vpop.f32.mrf.mxu3 }
 0x492   :  { %1370 = vst [vmem:[%s2391_s17 + $0x10] sm:$0xff] %v1366_v38  ;;  %v1362_v51 = vadd.f32 %v1361_v44, %v1343_v43 }
 0x499   :  { %v1753_v52 = vld [vmem:[%s2397_s30 + $0x18] sm:$0xff] }
 0x49a   :  { %v1367_v48 = vadd.f32 %v1753_v52, %v1362_v51 }
 0x49c   :  { %1371 = vst [vmem:[%s2391_s17 + $0x18] sm:$0xff] %v1367_v48 }

</bundles_post_ra>
